<compile_context>
chip_gen: v7x
topology: tpu7x:2x2x1
jax: 0.10.0
libtpu: 0.0.40
codegen_flags: <defaults>
</compile_context>

<pallas_src>
import functools
import math

import jax
import jax.numpy as jnp
from jax.experimental import pallas as pl
from jax.experimental.pallas import tpu as pltpu


def _lm_kernel(ids_ref,                                    # SMEM (CB,) int32
               emb_ref, wxh_ref, whh_ref, bh_ref, who_ref, bo_ref,   # VMEM
               out_ref,                                    # VMEM (CB, V) f32
               xemb_scr, hall_scr,                         # VMEM scratch
               *, chunk, batch):
    """Whole-chunk RNN LM forward in a single invocation (all VMEM-resident)."""
    CB, V = out_ref.shape          # CB = chunk * batch, V = num_words
    H = wxh_ref.shape[0]           # num_internals

    # ---- real embedding gather: ids come from SMEM, rows sliced from VMEM ----
    # (no one-hot matmul; O(CB*H) bytes of VMEM reads instead of O(CB*V*H) flops)
    for i in range(CB):                                   # static, fully unrolled
        xemb_scr[pl.ds(i, 1), :] = emb_ref[pl.ds(ids_ref[i], 1), :]

    # ---- hoisted pre-recurrence matmul: bf16 MXU operands, f32 accumulate ----
    x_emb = xemb_scr[...]                                            # (CB, H) f32
    x_pre = (jnp.dot(x_emb.astype(jnp.bfloat16), wxh_ref[...],
                     preferred_element_type=jnp.float32)
             + bh_ref[...])                                          # bias once
    x_pre = x_pre.reshape(chunk, batch, H)                 # stays in registers

    # ---- serial recurrence: only h @ W_hh + tanh on the critical path ----
    whh = whh_ref[...]                                     # bf16, loaded once
    h = jnp.zeros((batch, H), jnp.float32)
    for t in range(chunk):                                 # static t -> static slices
        h = jnp.tanh(x_pre[t]
                     + jnp.dot(h.astype(jnp.bfloat16), whh,
                               preferred_element_type=jnp.float32))
        hall_scr[pl.ds(t * batch, batch), :] = h           # off the critical path

    # ---- hoisted, batched vocab projection (lane-dense output) ----
    h_all = hall_scr[...]                                            # (CB, H) f32
    out_ref[...] = (jnp.dot(h_all.astype(jnp.bfloat16), who_ref[...],
                            preferred_element_type=jnp.float32)
                    + bo_ref[...]).astype(out_ref.dtype)


def rnn_lm_forward(word_ids, emb, wxh, whh, bh, who, bo):
    """word_ids: (chunk, batch) int32 -> logits (chunk, batch, num_words) f32."""
    C, B = word_ids.shape
    V, H = emb.shape
    CB = C * B
    ids = word_ids.reshape(CB).astype(jnp.int32)

    # MXU operands in bf16 (weights cast once here); embedding table stays f32
    # so the gather itself is exact; biases / elementwise stay f32.
    wxh_b = wxh.astype(jnp.bfloat16)
    whh_b = whh.astype(jnp.bfloat16)
    who_b = who.astype(jnp.bfloat16)

    smem = pl.BlockSpec(memory_space=pltpu.MemorySpace.SMEM)
    vmem = pl.BlockSpec(memory_space=pltpu.MemorySpace.VMEM)

    def _nbytes(a):
        return int(a.size) * jnp.dtype(a.dtype).itemsize

    buf_bytes = (sum(_nbytes(a) for a in (ids, emb, wxh_b, whh_b, bh, who_b, bo))
                 + CB * V * 4          # output
                 + 2 * CB * H * 4)     # scratch (gathered emb + hidden states)
    vmem_limit = int(max(4 << 20, 2 * buf_bytes))

    logits_flat = pl.pallas_call(
        functools.partial(_lm_kernel, chunk=C, batch=B),
        out_shape=jax.ShapeDtypeStruct((CB, V), jnp.float32),
        in_specs=[smem, vmem, vmem, vmem, vmem, vmem, vmem],
        out_specs=vmem,
        scratch_shapes=[
            pltpu.VMEM((CB, H), jnp.float32),   # gathered embedding rows
            pltpu.VMEM((CB, H), jnp.float32),   # all hidden states
        ],
        compiler_params=pltpu.CompilerParams(vmem_limit_bytes=vmem_limit),
    )(ids, emb, wxh_b, whh_b, bh, who_b, bo)
    return logits_flat.reshape(C, B, V)


def xavier_uniform(key, shape, fan_in, fan_out):
    bound = math.sqrt(6.0 / float(fan_in + fan_out))
    return jax.random.uniform(key, shape, jnp.float32, -bound, bound)


def multiclass_word_classification_forward(word_ids, params):
    """Forward of MulticlassWordClassification: scores = lm(batch['input'])."""
    return rnn_lm_forward(word_ids, params["emb"], params["wxh"], params["whh"],
                          params["bh"], params["who"], params["bo"])


def ref_forward(word_ids, p, matmul_dtype):
    """Pure-JAX reference. matmul_dtype=bf16 mirrors the kernel's MXU casts;
    matmul_dtype=f32 uses HIGHEST-precision dots (PyTorch f32 semantics)."""
    C, B = word_ids.shape
    H = p["wxh"].shape[0]
    prec = jax.lax.Precision.HIGHEST if matmul_dtype == jnp.float32 else None

    def mm(a, b):
        return jnp.dot(a.astype(matmul_dtype), b.astype(matmul_dtype),
                       preferred_element_type=jnp.float32, precision=prec)

    x = p["emb"][word_ids]                                  # (C,B,H) exact gather
    x_pre = mm(x.reshape(C * B, H), p["wxh"]) + p["bh"]
    x_pre = x_pre.reshape(C, B, H)
    h = jnp.zeros((B, H), jnp.float32)
    hs = []
    for t in range(C):
        h = jnp.tanh(x_pre[t] + mm(h, p["whh"]))
        hs.append(h)
    h_all = jnp.concatenate(hs, axis=0)
    logits = mm(h_all, p["who"]) + p["bo"]
    return logits.reshape(C, B, -1)


if __name__ == "__main__":
    # Small shapes consistent with the module: vocab / hidden sized to the
    # TPU lane width, short chunk & batch.
    num_words = 128       # vocab size (num_words)
    num_internals = 128   # hidden size (num_internals)
    chunk_size = 8
    batch_size = 8

    key = jax.random.PRNGKey(0)
    k_emb, k_xh, k_hh, k_ho, k_ids = jax.random.split(key, 5)

    params = {
        "emb": xavier_uniform(k_emb, (num_words, num_internals),
                              num_words, num_internals),
        "wxh": xavier_uniform(k_xh, (num_internals, num_internals),
                              num_internals, num_internals),
        "whh": xavier_uniform(k_hh, (num_internals, num_internals),
                              num_internals, num_internals),
        "bh": jnp.zeros((1, num_internals), jnp.float32),
        "who": xavier_uniform(k_ho, (num_internals, num_words),
                              num_internals, num_words),
        "bo": jnp.zeros((1, num_words), jnp.float32),
    }

    # batch['input']: (chunk_size, batch_size) word ids.
    word_ids = jax.random.randint(k_ids, (chunk_size, batch_size), 0, num_words,
                                  dtype=jnp.int32)

    scores = multiclass_word_classification_forward(word_ids, params)
    scores = jax.block_until_ready(scores)

    assert scores.shape == (chunk_size, batch_size, num_words)
    assert scores.dtype == jnp.float32
    assert bool(jnp.all(jnp.isfinite(scores)))

    # Tight check against a reference that applies the same bf16 MXU casts.
    ref_b = ref_forward(word_ids, params, jnp.bfloat16)
    assert bool(jnp.allclose(scores, ref_b, atol=1e-3, rtol=1e-3))

    # Looser fidelity check against a full-f32 (PyTorch-semantics) reference;
    # the only deviation is the bf16 rounding of MXU operands.
    ref_f = ref_forward(word_ids, params, jnp.float32)
    assert bool(jnp.allclose(scores, ref_f, atol=3e-2, rtol=3e-2))

    print("KERNEL_OK")
</pallas_src>

<mosaic_0001>
module attributes {stable_mosaic.version = 11 : i64} {
  func.func @_lm_kernel(%arg0: memref<64xi32, #tpu.memory_space<smem>>, %arg1: memref<128x128xf32, #tpu.memory_space<vmem>>, %arg2: memref<128x128xbf16, #tpu.memory_space<vmem>>, %arg3: memref<128x128xbf16, #tpu.memory_space<vmem>>, %arg4: memref<1x128xf32, #tpu.memory_space<vmem>>, %arg5: memref<128x128xbf16, #tpu.memory_space<vmem>>, %arg6: memref<1x128xf32, #tpu.memory_space<vmem>>, %arg7: memref<64x128xf32, #tpu.memory_space<vmem>>, %arg8: memref<64x128xf32, #tpu.memory_space<vmem>>, %arg9: memref<64x128xf32, #tpu.memory_space<vmem>>) attributes {dimension_semantics = [], scalar_prefetch = 0 : i64, scratch_operands = 2 : i64, tpu.core_type = #tpu.core_type<tc>} {
    %c0 = arith.constant 0 : index
    %0 = memref.load %arg0[%c0] : memref<64xi32, #tpu.memory_space<smem>>
    %1 = arith.index_cast %0 : i32 to index
    %c0_0 = arith.constant 0 : index
    %2 = vector.load %arg1[%1, %c0_0] : memref<128x128xf32, #tpu.memory_space<vmem>>, vector<1x128xf32>
    %c0_1 = arith.constant 0 : index
    %c0_2 = arith.constant 0 : index
    %3 = vector.load %arg8[%c0_1, %c0_2] : memref<64x128xf32, #tpu.memory_space<vmem>>, vector<1x128xf32>
    tpu.vector_store %arg8[%c0_1, %c0_2], %2 {strides = array<i32>} : memref<64x128xf32, #tpu.memory_space<vmem>>, vector<1x128xf32>,
    %c1 = arith.constant 1 : index
    %4 = memref.load %arg0[%c1] : memref<64xi32, #tpu.memory_space<smem>>
    %5 = arith.index_cast %4 : i32 to index
    %c0_3 = arith.constant 0 : index
    %6 = vector.load %arg1[%5, %c0_3] : memref<128x128xf32, #tpu.memory_space<vmem>>, vector<1x128xf32>
    %c1_4 = arith.constant 1 : index
    %c0_5 = arith.constant 0 : index
    %7 = vector.load %arg8[%c1_4, %c0_5] : memref<64x128xf32, #tpu.memory_space<vmem>>, vector<1x128xf32>
    tpu.vector_store %arg8[%c1_4, %c0_5], %6 {strides = array<i32>} : memref<64x128xf32, #tpu.memory_space<vmem>>, vector<1x128xf32>,
    %c2 = arith.constant 2 : index
    %8 = memref.load %arg0[%c2] : memref<64xi32, #tpu.memory_space<smem>>
    %9 = arith.index_cast %8 : i32 to index
    %c0_6 = arith.constant 0 : index
    %10 = vector.load %arg1[%9, %c0_6] : memref<128x128xf32, #tpu.memory_space<vmem>>, vector<1x128xf32>
    %c2_7 = arith.constant 2 : index
    %c0_8 = arith.constant 0 : index
    %11 = vector.load %arg8[%c2_7, %c0_8] : memref<64x128xf32, #tpu.memory_space<vmem>>, vector<1x128xf32>
    tpu.vector_store %arg8[%c2_7, %c0_8], %10 {strides = array<i32>} : memref<64x128xf32, #tpu.memory_space<vmem>>, vector<1x128xf32>,
    %c3 = arith.constant 3 : index
    %12 = memref.load %arg0[%c3] : memref<64xi32, #tpu.memory_space<smem>>
    %13 = arith.index_cast %12 : i32 to index
    %c0_9 = arith.constant 0 : index
    %14 = vector.load %arg1[%13, %c0_9] : memref<128x128xf32, #tpu.memory_space<vmem>>, vector<1x128xf32>
    %c3_10 = arith.constant 3 : index
    %c0_11 = arith.constant 0 : index
    %15 = vector.load %arg8[%c3_10, %c0_11] : memref<64x128xf32, #tpu.memory_space<vmem>>, vector<1x128xf32>
    tpu.vector_store %arg8[%c3_10, %c0_11], %14 {strides = array<i32>} : memref<64x128xf32, #tpu.memory_space<vmem>>, vector<1x128xf32>,
    %c4 = arith.constant 4 : index
    %16 = memref.load %arg0[%c4] : memref<64xi32, #tpu.memory_space<smem>>
    %17 = arith.index_cast %16 : i32 to index
    %c0_12 = arith.constant 0 : index
    %18 = vector.load %arg1[%17, %c0_12] : memref<128x128xf32, #tpu.memory_space<vmem>>, vector<1x128xf32>
    %c4_13 = arith.constant 4 : index
    %c0_14 = arith.constant 0 : index
    %19 = vector.load %arg8[%c4_13, %c0_14] : memref<64x128xf32, #tpu.memory_space<vmem>>, vector<1x128xf32>
    tpu.vector_store %arg8[%c4_13, %c0_14], %18 {strides = array<i32>} : memref<64x128xf32, #tpu.memory_space<vmem>>, vector<1x128xf32>,
    %c5 = arith.constant 5 : index
    %20 = memref.load %arg0[%c5] : memref<64xi32, #tpu.memory_space<smem>>
    %21 = arith.index_cast %20 : i32 to index
    %c0_15 = arith.constant 0 : index
    %22 = vector.load %arg1[%21, %c0_15] : memref<128x128xf32, #tpu.memory_space<vmem>>, vector<1x128xf32>
    %c5_16 = arith.constant 5 : index
    %c0_17 = arith.constant 0 : index
    %23 = vector.load %arg8[%c5_16, %c0_17] : memref<64x128xf32, #tpu.memory_space<vmem>>, vector<1x128xf32>
    tpu.vector_store %arg8[%c5_16, %c0_17], %22 {strides = array<i32>} : memref<64x128xf32, #tpu.memory_space<vmem>>, vector<1x128xf32>,
    %c6 = arith.constant 6 : index
    %24 = memref.load %arg0[%c6] : memref<64xi32, #tpu.memory_space<smem>>
    %25 = arith.index_cast %24 : i32 to index
    %c0_18 = arith.constant 0 : index
    %26 = vector.load %arg1[%25, %c0_18] : memref<128x128xf32, #tpu.memory_space<vmem>>, vector<1x128xf32>
    %c6_19 = arith.constant 6 : index
    %c0_20 = arith.constant 0 : index
    %27 = vector.load %arg8[%c6_19, %c0_20] : memref<64x128xf32, #tpu.memory_space<vmem>>, vector<1x128xf32>
    tpu.vector_store %arg8[%c6_19, %c0_20], %26 {strides = array<i32>} : memref<64x128xf32, #tpu.memory_space<vmem>>, vector<1x128xf32>,
    %c7 = arith.constant 7 : index
    %28 = memref.load %arg0[%c7] : memref<64xi32, #tpu.memory_space<smem>>
    %29 = arith.index_cast %28 : i32 to index
    %c0_21 = arith.constant 0 : index
    %30 = vector.load %arg1[%29, %c0_21] : memref<128x128xf32, #tpu.memory_space<vmem>>, vector<1x128xf32>
    %c7_22 = arith.constant 7 : index
    %c0_23 = arith.constant 0 : index
    %31 = vector.load %arg8[%c7_22, %c0_23] : memref<64x128xf32, #tpu.memory_space<vmem>>, vector<1x128xf32>
    tpu.vector_store %arg8[%c7_22, %c0_23], %30 {strides = array<i32>} : memref<64x128xf32, #tpu.memory_space<vmem>>, vector<1x128xf32>,
    %c8 = arith.constant 8 : index
    %32 = memref.load %arg0[%c8] : memref<64xi32, #tpu.memory_space<smem>>
    %33 = arith.index_cast %32 : i32 to index
    %c0_24 = arith.constant 0 : index
    %34 = vector.load %arg1[%33, %c0_24] : memref<128x128xf32, #tpu.memory_space<vmem>>, vector<1x128xf32>
    %c8_25 = arith.constant 8 : index
    %c0_26 = arith.constant 0 : index
    %35 = vector.load %arg8[%c8_25, %c0_26] : memref<64x128xf32, #tpu.memory_space<vmem>>, vector<1x128xf32>
    tpu.vector_store %arg8[%c8_25, %c0_26], %34 {strides = array<i32>} : memref<64x128xf32, #tpu.memory_space<vmem>>, vector<1x128xf32>,
    %c9 = arith.constant 9 : index
    %36 = memref.load %arg0[%c9] : memref<64xi32, #tpu.memory_space<smem>>
    %37 = arith.index_cast %36 : i32 to index
    %c0_27 = arith.constant 0 : index
    %38 = vector.load %arg1[%37, %c0_27] : memref<128x128xf32, #tpu.memory_space<vmem>>, vector<1x128xf32>
    %c9_28 = arith.constant 9 : index
    %c0_29 = arith.constant 0 : index
    %39 = vector.load %arg8[%c9_28, %c0_29] : memref<64x128xf32, #tpu.memory_space<vmem>>, vector<1x128xf32>
    tpu.vector_store %arg8[%c9_28, %c0_29], %38 {strides = array<i32>} : memref<64x128xf32, #tpu.memory_space<vmem>>, vector<1x128xf32>,
    %c10 = arith.constant 10 : index
    %40 = memref.load %arg0[%c10] : memref<64xi32, #tpu.memory_space<smem>>
    %41 = arith.index_cast %40 : i32 to index
    %c0_30 = arith.constant 0 : index
    %42 = vector.load %arg1[%41, %c0_30] : memref<128x128xf32, #tpu.memory_space<vmem>>, vector<1x128xf32>
    %c10_31 = arith.constant 10 : index
    %c0_32 = arith.constant 0 : index
    %43 = vector.load %arg8[%c10_31, %c0_32] : memref<64x128xf32, #tpu.memory_space<vmem>>, vector<1x128xf32>
    tpu.vector_store %arg8[%c10_31, %c0_32], %42 {strides = array<i32>} : memref<64x128xf32, #tpu.memory_space<vmem>>, vector<1x128xf32>,
    %c11 = arith.constant 11 : index
    %44 = memref.load %arg0[%c11] : memref<64xi32, #tpu.memory_space<smem>>
    %45 = arith.index_cast %44 : i32 to index
    %c0_33 = arith.constant 0 : index
    %46 = vector.load %arg1[%45, %c0_33] : memref<128x128xf32, #tpu.memory_space<vmem>>, vector<1x128xf32>
    %c11_34 = arith.constant 11 : index
    %c0_35 = arith.constant 0 : index
    %47 = vector.load %arg8[%c11_34, %c0_35] : memref<64x128xf32, #tpu.memory_space<vmem>>, vector<1x128xf32>
    tpu.vector_store %arg8[%c11_34, %c0_35], %46 {strides = array<i32>} : memref<64x128xf32, #tpu.memory_space<vmem>>, vector<1x128xf32>,
    %c12 = arith.constant 12 : index
    %48 = memref.load %arg0[%c12] : memref<64xi32, #tpu.memory_space<smem>>
    %49 = arith.index_cast %48 : i32 to index
    %c0_36 = arith.constant 0 : index
    %50 = vector.load %arg1[%49, %c0_36] : memref<128x128xf32, #tpu.memory_space<vmem>>, vector<1x128xf32>
    %c12_37 = arith.constant 12 : index
    %c0_38 = arith.constant 0 : index
    %51 = vector.load %arg8[%c12_37, %c0_38] : memref<64x128xf32, #tpu.memory_space<vmem>>, vector<1x128xf32>
    tpu.vector_store %arg8[%c12_37, %c0_38], %50 {strides = array<i32>} : memref<64x128xf32, #tpu.memory_space<vmem>>, vector<1x128xf32>,
    %c13 = arith.constant 13 : index
    %52 = memref.load %arg0[%c13] : memref<64xi32, #tpu.memory_space<smem>>
    %53 = arith.index_cast %52 : i32 to index
    %c0_39 = arith.constant 0 : index
    %54 = vector.load %arg1[%53, %c0_39] : memref<128x128xf32, #tpu.memory_space<vmem>>, vector<1x128xf32>
    %c13_40 = arith.constant 13 : index
    %c0_41 = arith.constant 0 : index
    %55 = vector.load %arg8[%c13_40, %c0_41] : memref<64x128xf32, #tpu.memory_space<vmem>>, vector<1x128xf32>
    tpu.vector_store %arg8[%c13_40, %c0_41], %54 {strides = array<i32>} : memref<64x128xf32, #tpu.memory_space<vmem>>, vector<1x128xf32>,
    %c14 = arith.constant 14 : index
    %56 = memref.load %arg0[%c14] : memref<64xi32, #tpu.memory_space<smem>>
    %57 = arith.index_cast %56 : i32 to index
    %c0_42 = arith.constant 0 : index
    %58 = vector.load %arg1[%57, %c0_42] : memref<128x128xf32, #tpu.memory_space<vmem>>, vector<1x128xf32>
    %c14_43 = arith.constant 14 : index
    %c0_44 = arith.constant 0 : index
    %59 = vector.load %arg8[%c14_43, %c0_44] : memref<64x128xf32, #tpu.memory_space<vmem>>, vector<1x128xf32>
    tpu.vector_store %arg8[%c14_43, %c0_44], %58 {strides = array<i32>} : memref<64x128xf32, #tpu.memory_space<vmem>>, vector<1x128xf32>,
    %c15 = arith.constant 15 : index
    %60 = memref.load %arg0[%c15] : memref<64xi32, #tpu.memory_space<smem>>
    %61 = arith.index_cast %60 : i32 to index
    %c0_45 = arith.constant 0 : index
    %62 = vector.load %arg1[%61, %c0_45] : memref<128x128xf32, #tpu.memory_space<vmem>>, vector<1x128xf32>
    %c15_46 = arith.constant 15 : index
    %c0_47 = arith.constant 0 : index
    %63 = vector.load %arg8[%c15_46, %c0_47] : memref<64x128xf32, #tpu.memory_space<vmem>>, vector<1x128xf32>
    tpu.vector_store %arg8[%c15_46, %c0_47], %62 {strides = array<i32>} : memref<64x128xf32, #tpu.memory_space<vmem>>, vector<1x128xf32>,
    %c16 = arith.constant 16 : index
    %64 = memref.load %arg0[%c16] : memref<64xi32, #tpu.memory_space<smem>>
    %65 = arith.index_cast %64 : i32 to index
    %c0_48 = arith.constant 0 : index
    %66 = vector.load %arg1[%65, %c0_48] : memref<128x128xf32, #tpu.memory_space<vmem>>, vector<1x128xf32>
    %c16_49 = arith.constant 16 : index
    %c0_50 = arith.constant 0 : index
    %67 = vector.load %arg8[%c16_49, %c0_50] : memref<64x128xf32, #tpu.memory_space<vmem>>, vector<1x128xf32>
    tpu.vector_store %arg8[%c16_49, %c0_50], %66 {strides = array<i32>} : memref<64x128xf32, #tpu.memory_space<vmem>>, vector<1x128xf32>,
    %c17 = arith.constant 17 : index
    %68 = memref.load %arg0[%c17] : memref<64xi32, #tpu.memory_space<smem>>
    %69 = arith.index_cast %68 : i32 to index
    %c0_51 = arith.constant 0 : index
    %70 = vector.load %arg1[%69, %c0_51] : memref<128x128xf32, #tpu.memory_space<vmem>>, vector<1x128xf32>
    %c17_52 = arith.constant 17 : index
    %c0_53 = arith.constant 0 : index
    %71 = vector.load %arg8[%c17_52, %c0_53] : memref<64x128xf32, #tpu.memory_space<vmem>>, vector<1x128xf32>
    tpu.vector_store %arg8[%c17_52, %c0_53], %70 {strides = array<i32>} : memref<64x128xf32, #tpu.memory_space<vmem>>, vector<1x128xf32>,
    %c18 = arith.constant 18 : index
    %72 = memref.load %arg0[%c18] : memref<64xi32, #tpu.memory_space<smem>>
    %73 = arith.index_cast %72 : i32 to index
    %c0_54 = arith.constant 0 : index
    %74 = vector.load %arg1[%73, %c0_54] : memref<128x128xf32, #tpu.memory_space<vmem>>, vector<1x128xf32>
    %c18_55 = arith.constant 18 : index
    %c0_56 = arith.constant 0 : index
    %75 = vector.load %arg8[%c18_55, %c0_56] : memref<64x128xf32, #tpu.memory_space<vmem>>, vector<1x128xf32>
    tpu.vector_store %arg8[%c18_55, %c0_56], %74 {strides = array<i32>} : memref<64x128xf32, #tpu.memory_space<vmem>>, vector<1x128xf32>,
    %c19 = arith.constant 19 : index
    %76 = memref.load %arg0[%c19] : memref<64xi32, #tpu.memory_space<smem>>
    %77 = arith.index_cast %76 : i32 to index
    %c0_57 = arith.constant 0 : index
    %78 = vector.load %arg1[%77, %c0_57] : memref<128x128xf32, #tpu.memory_space<vmem>>, vector<1x128xf32>
    %c19_58 = arith.constant 19 : index
    %c0_59 = arith.constant 0 : index
    %79 = vector.load %arg8[%c19_58, %c0_59] : memref<64x128xf32, #tpu.memory_space<vmem>>, vector<1x128xf32>
    tpu.vector_store %arg8[%c19_58, %c0_59], %78 {strides = array<i32>} : memref<64x128xf32, #tpu.memory_space<vmem>>, vector<1x128xf32>,
    %c20 = arith.constant 20 : index
    %80 = memref.load %arg0[%c20] : memref<64xi32, #tpu.memory_space<smem>>
    %81 = arith.index_cast %80 : i32 to index
    %c0_60 = arith.constant 0 : index
    %82 = vector.load %arg1[%81, %c0_60] : memref<128x128xf32, #tpu.memory_space<vmem>>, vector<1x128xf32>
    %c20_61 = arith.constant 20 : index
    %c0_62 = arith.constant 0 : index
    %83 = vector.load %arg8[%c20_61, %c0_62] : memref<64x128xf32, #tpu.memory_space<vmem>>, vector<1x128xf32>
    tpu.vector_store %arg8[%c20_61, %c0_62], %82 {strides = array<i32>} : memref<64x128xf32, #tpu.memory_space<vmem>>, vector<1x128xf32>,
    %c21 = arith.constant 21 : index
    %84 = memref.load %arg0[%c21] : memref<64xi32, #tpu.memory_space<smem>>
    %85 = arith.index_cast %84 : i32 to index
    %c0_63 = arith.constant 0 : index
    %86 = vector.load %arg1[%85, %c0_63] : memref<128x128xf32, #tpu.memory_space<vmem>>, vector<1x128xf32>
    %c21_64 = arith.constant 21 : index
    %c0_65 = arith.constant 0 : index
    %87 = vector.load %arg8[%c21_64, %c0_65] : memref<64x128xf32, #tpu.memory_space<vmem>>, vector<1x128xf32>
    tpu.vector_store %arg8[%c21_64, %c0_65], %86 {strides = array<i32>} : memref<64x128xf32, #tpu.memory_space<vmem>>, vector<1x128xf32>,
    %c22 = arith.constant 22 : index
    %88 = memref.load %arg0[%c22] : memref<64xi32, #tpu.memory_space<smem>>
    %89 = arith.index_cast %88 : i32 to index
    %c0_66 = arith.constant 0 : index
    %90 = vector.load %arg1[%89, %c0_66] : memref<128x128xf32, #tpu.memory_space<vmem>>, vector<1x128xf32>
    %c22_67 = arith.constant 22 : index
    %c0_68 = arith.constant 0 : index
    %91 = vector.load %arg8[%c22_67, %c0_68] : memref<64x128xf32, #tpu.memory_space<vmem>>, vector<1x128xf32>
    tpu.vector_store %arg8[%c22_67, %c0_68], %90 {strides = array<i32>} : memref<64x128xf32, #tpu.memory_space<vmem>>, vector<1x128xf32>,
    %c23 = arith.constant 23 : index
    %92 = memref.load %arg0[%c23] : memref<64xi32, #tpu.memory_space<smem>>
    %93 = arith.index_cast %92 : i32 to index
    %c0_69 = arith.constant 0 : index
    %94 = vector.load %arg1[%93, %c0_69] : memref<128x128xf32, #tpu.memory_space<vmem>>, vector<1x128xf32>
    %c23_70 = arith.constant 23 : index
    %c0_71 = arith.constant 0 : index
    %95 = vector.load %arg8[%c23_70, %c0_71] : memref<64x128xf32, #tpu.memory_space<vmem>>, vector<1x128xf32>
    tpu.vector_store %arg8[%c23_70, %c0_71], %94 {strides = array<i32>} : memref<64x128xf32, #tpu.memory_space<vmem>>, vector<1x128xf32>,
    %c24 = arith.constant 24 : index
    %96 = memref.load %arg0[%c24] : memref<64xi32, #tpu.memory_space<smem>>
    %97 = arith.index_cast %96 : i32 to index
    %c0_72 = arith.constant 0 : index
    %98 = vector.load %arg1[%97, %c0_72] : memref<128x128xf32, #tpu.memory_space<vmem>>, vector<1x128xf32>
    %c24_73 = arith.constant 24 : index
    %c0_74 = arith.constant 0 : index
    %99 = vector.load %arg8[%c24_73, %c0_74] : memref<64x128xf32, #tpu.memory_space<vmem>>, vector<1x128xf32>
    tpu.vector_store %arg8[%c24_73, %c0_74], %98 {strides = array<i32>} : memref<64x128xf32, #tpu.memory_space<vmem>>, vector<1x128xf32>,
    %c25 = arith.constant 25 : index
    %100 = memref.load %arg0[%c25] : memref<64xi32, #tpu.memory_space<smem>>
    %101 = arith.index_cast %100 : i32 to index
    %c0_75 = arith.constant 0 : index
    %102 = vector.load %arg1[%101, %c0_75] : memref<128x128xf32, #tpu.memory_space<vmem>>, vector<1x128xf32>
    %c25_76 = arith.constant 25 : index
    %c0_77 = arith.constant 0 : index
    %103 = vector.load %arg8[%c25_76, %c0_77] : memref<64x128xf32, #tpu.memory_space<vmem>>, vector<1x128xf32>
    tpu.vector_store %arg8[%c25_76, %c0_77], %102 {strides = array<i32>} : memref<64x128xf32, #tpu.memory_space<vmem>>, vector<1x128xf32>,
    %c26 = arith.constant 26 : index
    %104 = memref.load %arg0[%c26] : memref<64xi32, #tpu.memory_space<smem>>
    %105 = arith.index_cast %104 : i32 to index
    %c0_78 = arith.constant 0 : index
    %106 = vector.load %arg1[%105, %c0_78] : memref<128x128xf32, #tpu.memory_space<vmem>>, vector<1x128xf32>
    %c26_79 = arith.constant 26 : index
    %c0_80 = arith.constant 0 : index
    %107 = vector.load %arg8[%c26_79, %c0_80] : memref<64x128xf32, #tpu.memory_space<vmem>>, vector<1x128xf32>
    tpu.vector_store %arg8[%c26_79, %c0_80], %106 {strides = array<i32>} : memref<64x128xf32, #tpu.memory_space<vmem>>, vector<1x128xf32>,
    %c27 = arith.constant 27 : index
    %108 = memref.load %arg0[%c27] : memref<64xi32, #tpu.memory_space<smem>>
    %109 = arith.index_cast %108 : i32 to index
    %c0_81 = arith.constant 0 : index
    %110 = vector.load %arg1[%109, %c0_81] : memref<128x128xf32, #tpu.memory_space<vmem>>, vector<1x128xf32>
    %c27_82 = arith.constant 27 : index
    %c0_83 = arith.constant 0 : index
    %111 = vector.load %arg8[%c27_82, %c0_83] : memref<64x128xf32, #tpu.memory_space<vmem>>, vector<1x128xf32>
    tpu.vector_store %arg8[%c27_82, %c0_83], %110 {strides = array<i32>} : memref<64x128xf32, #tpu.memory_space<vmem>>, vector<1x128xf32>,
    %c28 = arith.constant 28 : index
    %112 = memref.load %arg0[%c28] : memref<64xi32, #tpu.memory_space<smem>>
    %113 = arith.index_cast %112 : i32 to index
    %c0_84 = arith.constant 0 : index
    %114 = vector.load %arg1[%113, %c0_84] : memref<128x128xf32, #tpu.memory_space<vmem>>, vector<1x128xf32>
    %c28_85 = arith.constant 28 : index
    %c0_86 = arith.constant 0 : index
    %115 = vector.load %arg8[%c28_85, %c0_86] : memref<64x128xf32, #tpu.memory_space<vmem>>, vector<1x128xf32>
    tpu.vector_store %arg8[%c28_85, %c0_86], %114 {strides = array<i32>} : memref<64x128xf32, #tpu.memory_space<vmem>>, vector<1x128xf32>,
    %c29 = arith.constant 29 : index
    %116 = memref.load %arg0[%c29] : memref<64xi32, #tpu.memory_space<smem>>
    %117 = arith.index_cast %116 : i32 to index
    %c0_87 = arith.constant 0 : index
    %118 = vector.load %arg1[%117, %c0_87] : memref<128x128xf32, #tpu.memory_space<vmem>>, vector<1x128xf32>
    %c29_88 = arith.constant 29 : index
    %c0_89 = arith.constant 0 : index
    %119 = vector.load %arg8[%c29_88, %c0_89] : memref<64x128xf32, #tpu.memory_space<vmem>>, vector<1x128xf32>
    tpu.vector_store %arg8[%c29_88, %c0_89], %118 {strides = array<i32>} : memref<64x128xf32, #tpu.memory_space<vmem>>, vector<1x128xf32>,
    %c30 = arith.constant 30 : index
    %120 = memref.load %arg0[%c30] : memref<64xi32, #tpu.memory_space<smem>>
    %121 = arith.index_cast %120 : i32 to index
    %c0_90 = arith.constant 0 : index
    %122 = vector.load %arg1[%121, %c0_90] : memref<128x128xf32, #tpu.memory_space<vmem>>, vector<1x128xf32>
    %c30_91 = arith.constant 30 : index
    %c0_92 = arith.constant 0 : index
    %123 = vector.load %arg8[%c30_91, %c0_92] : memref<64x128xf32, #tpu.memory_space<vmem>>, vector<1x128xf32>
    tpu.vector_store %arg8[%c30_91, %c0_92], %122 {strides = array<i32>} : memref<64x128xf32, #tpu.memory_space<vmem>>, vector<1x128xf32>,
    %c31 = arith.constant 31 : index
    %124 = memref.load %arg0[%c31] : memref<64xi32, #tpu.memory_space<smem>>
    %125 = arith.index_cast %124 : i32 to index
    %c0_93 = arith.constant 0 : index
    %126 = vector.load %arg1[%125, %c0_93] : memref<128x128xf32, #tpu.memory_space<vmem>>, vector<1x128xf32>
    %c31_94 = arith.constant 31 : index
    %c0_95 = arith.constant 0 : index
    %127 = vector.load %arg8[%c31_94, %c0_95] : memref<64x128xf32, #tpu.memory_space<vmem>>, vector<1x128xf32>
    tpu.vector_store %arg8[%c31_94, %c0_95], %126 {strides = array<i32>} : memref<64x128xf32, #tpu.memory_space<vmem>>, vector<1x128xf32>,
    %c32 = arith.constant 32 : index
    %128 = memref.load %arg0[%c32] : memref<64xi32, #tpu.memory_space<smem>>
    %129 = arith.index_cast %128 : i32 to index
    %c0_96 = arith.constant 0 : index
    %130 = vector.load %arg1[%129, %c0_96] : memref<128x128xf32, #tpu.memory_space<vmem>>, vector<1x128xf32>
    %c32_97 = arith.constant 32 : index
    %c0_98 = arith.constant 0 : index
    %131 = vector.load %arg8[%c32_97, %c0_98] : memref<64x128xf32, #tpu.memory_space<vmem>>, vector<1x128xf32>
    tpu.vector_store %arg8[%c32_97, %c0_98], %130 {strides = array<i32>} : memref<64x128xf32, #tpu.memory_space<vmem>>, vector<1x128xf32>,
    %c33 = arith.constant 33 : index
    %132 = memref.load %arg0[%c33] : memref<64xi32, #tpu.memory_space<smem>>
    %133 = arith.index_cast %132 : i32 to index
    %c0_99 = arith.constant 0 : index
    %134 = vector.load %arg1[%133, %c0_99] : memref<128x128xf32, #tpu.memory_space<vmem>>, vector<1x128xf32>
    %c33_100 = arith.constant 33 : index
    %c0_101 = arith.constant 0 : index
    %135 = vector.load %arg8[%c33_100, %c0_101] : memref<64x128xf32, #tpu.memory_space<vmem>>, vector<1x128xf32>
    tpu.vector_store %arg8[%c33_100, %c0_101], %134 {strides = array<i32>} : memref<64x128xf32, #tpu.memory_space<vmem>>, vector<1x128xf32>,
    %c34 = arith.constant 34 : index
    %136 = memref.load %arg0[%c34] : memref<64xi32, #tpu.memory_space<smem>>
    %137 = arith.index_cast %136 : i32 to index
    %c0_102 = arith.constant 0 : index
    %138 = vector.load %arg1[%137, %c0_102] : memref<128x128xf32, #tpu.memory_space<vmem>>, vector<1x128xf32>
    %c34_103 = arith.constant 34 : index
    %c0_104 = arith.constant 0 : index
    %139 = vector.load %arg8[%c34_103, %c0_104] : memref<64x128xf32, #tpu.memory_space<vmem>>, vector<1x128xf32>
    tpu.vector_store %arg8[%c34_103, %c0_104], %138 {strides = array<i32>} : memref<64x128xf32, #tpu.memory_space<vmem>>, vector<1x128xf32>,
    %c35 = arith.constant 35 : index
    %140 = memref.load %arg0[%c35] : memref<64xi32, #tpu.memory_space<smem>>
    %141 = arith.index_cast %140 : i32 to index
    %c0_105 = arith.constant 0 : index
    %142 = vector.load %arg1[%141, %c0_105] : memref<128x128xf32, #tpu.memory_space<vmem>>, vector<1x128xf32>
    %c35_106 = arith.constant 35 : index
    %c0_107 = arith.constant 0 : index
    %143 = vector.load %arg8[%c35_106, %c0_107] : memref<64x128xf32, #tpu.memory_space<vmem>>, vector<1x128xf32>
    tpu.vector_store %arg8[%c35_106, %c0_107], %142 {strides = array<i32>} : memref<64x128xf32, #tpu.memory_space<vmem>>, vector<1x128xf32>,
    %c36 = arith.constant 36 : index
    %144 = memref.load %arg0[%c36] : memref<64xi32, #tpu.memory_space<smem>>
    %145 = arith.index_cast %144 : i32 to index
    %c0_108 = arith.constant 0 : index
    %146 = vector.load %arg1[%145, %c0_108] : memref<128x128xf32, #tpu.memory_space<vmem>>, vector<1x128xf32>
    %c36_109 = arith.constant 36 : index
    %c0_110 = arith.constant 0 : index
    %147 = vector.load %arg8[%c36_109, %c0_110] : memref<64x128xf32, #tpu.memory_space<vmem>>, vector<1x128xf32>
    tpu.vector_store %arg8[%c36_109, %c0_110], %146 {strides = array<i32>} : memref<64x128xf32, #tpu.memory_space<vmem>>, vector<1x128xf32>,
    %c37 = arith.constant 37 : index
    %148 = memref.load %arg0[%c37] : memref<64xi32, #tpu.memory_space<smem>>
    %149 = arith.index_cast %148 : i32 to index
    %c0_111 = arith.constant 0 : index
    %150 = vector.load %arg1[%149, %c0_111] : memref<128x128xf32, #tpu.memory_space<vmem>>, vector<1x128xf32>
    %c37_112 = arith.constant 37 : index
    %c0_113 = arith.constant 0 : index
    %151 = vector.load %arg8[%c37_112, %c0_113] : memref<64x128xf32, #tpu.memory_space<vmem>>, vector<1x128xf32>
    tpu.vector_store %arg8[%c37_112, %c0_113], %150 {strides = array<i32>} : memref<64x128xf32, #tpu.memory_space<vmem>>, vector<1x128xf32>,
    %c38 = arith.constant 38 : index
    %152 = memref.load %arg0[%c38] : memref<64xi32, #tpu.memory_space<smem>>
    %153 = arith.index_cast %152 : i32 to index
    %c0_114 = arith.constant 0 : index
    %154 = vector.load %arg1[%153, %c0_114] : memref<128x128xf32, #tpu.memory_space<vmem>>, vector<1x128xf32>
    %c38_115 = arith.constant 38 : index
    %c0_116 = arith.constant 0 : index
    %155 = vector.load %arg8[%c38_115, %c0_116] : memref<64x128xf32, #tpu.memory_space<vmem>>, vector<1x128xf32>
    tpu.vector_store %arg8[%c38_115, %c0_116], %154 {strides = array<i32>} : memref<64x128xf32, #tpu.memory_space<vmem>>, vector<1x128xf32>,
    %c39 = arith.constant 39 : index
    %156 = memref.load %arg0[%c39] : memref<64xi32, #tpu.memory_space<smem>>
    %157 = arith.index_cast %156 : i32 to index
    %c0_117 = arith.constant 0 : index
    %158 = vector.load %arg1[%157, %c0_117] : memref<128x128xf32, #tpu.memory_space<vmem>>, vector<1x128xf32>
    %c39_118 = arith.constant 39 : index
    %c0_119 = arith.constant 0 : index
    %159 = vector.load %arg8[%c39_118, %c0_119] : memref<64x128xf32, #tpu.memory_space<vmem>>, vector<1x128xf32>
    tpu.vector_store %arg8[%c39_118, %c0_119], %158 {strides = array<i32>} : memref<64x128xf32, #tpu.memory_space<vmem>>, vector<1x128xf32>,
    %c40 = arith.constant 40 : index
    %160 = memref.load %arg0[%c40] : memref<64xi32, #tpu.memory_space<smem>>
    %161 = arith.index_cast %160 : i32 to index
    %c0_120 = arith.constant 0 : index
    %162 = vector.load %arg1[%161, %c0_120] : memref<128x128xf32, #tpu.memory_space<vmem>>, vector<1x128xf32>
    %c40_121 = arith.constant 40 : index
    %c0_122 = arith.constant 0 : index
    %163 = vector.load %arg8[%c40_121, %c0_122] : memref<64x128xf32, #tpu.memory_space<vmem>>, vector<1x128xf32>
    tpu.vector_store %arg8[%c40_121, %c0_122], %162 {strides = array<i32>} : memref<64x128xf32, #tpu.memory_space<vmem>>, vector<1x128xf32>,
    %c41 = arith.constant 41 : index
    %164 = memref.load %arg0[%c41] : memref<64xi32, #tpu.memory_space<smem>>
    %165 = arith.index_cast %164 : i32 to index
    %c0_123 = arith.constant 0 : index
    %166 = vector.load %arg1[%165, %c0_123] : memref<128x128xf32, #tpu.memory_space<vmem>>, vector<1x128xf32>
    %c41_124 = arith.constant 41 : index
    %c0_125 = arith.constant 0 : index
    %167 = vector.load %arg8[%c41_124, %c0_125] : memref<64x128xf32, #tpu.memory_space<vmem>>, vector<1x128xf32>
    tpu.vector_store %arg8[%c41_124, %c0_125], %166 {strides = array<i32>} : memref<64x128xf32, #tpu.memory_space<vmem>>, vector<1x128xf32>,
    %c42 = arith.constant 42 : index
    %168 = memref.load %arg0[%c42] : memref<64xi32, #tpu.memory_space<smem>>
    %169 = arith.index_cast %168 : i32 to index
    %c0_126 = arith.constant 0 : index
    %170 = vector.load %arg1[%169, %c0_126] : memref<128x128xf32, #tpu.memory_space<vmem>>, vector<1x128xf32>
    %c42_127 = arith.constant 42 : index
    %c0_128 = arith.constant 0 : index
    %171 = vector.load %arg8[%c42_127, %c0_128] : memref<64x128xf32, #tpu.memory_space<vmem>>, vector<1x128xf32>
    tpu.vector_store %arg8[%c42_127, %c0_128], %170 {strides = array<i32>} : memref<64x128xf32, #tpu.memory_space<vmem>>, vector<1x128xf32>,
    %c43 = arith.constant 43 : index
    %172 = memref.load %arg0[%c43] : memref<64xi32, #tpu.memory_space<smem>>
    %173 = arith.index_cast %172 : i32 to index
    %c0_129 = arith.constant 0 : index
    %174 = vector.load %arg1[%173, %c0_129] : memref<128x128xf32, #tpu.memory_space<vmem>>, vector<1x128xf32>
    %c43_130 = arith.constant 43 : index
    %c0_131 = arith.constant 0 : index
    %175 = vector.load %arg8[%c43_130, %c0_131] : memref<64x128xf32, #tpu.memory_space<vmem>>, vector<1x128xf32>
    tpu.vector_store %arg8[%c43_130, %c0_131], %174 {strides = array<i32>} : memref<64x128xf32, #tpu.memory_space<vmem>>, vector<1x128xf32>,
    %c44 = arith.constant 44 : index
    %176 = memref.load %arg0[%c44] : memref<64xi32, #tpu.memory_space<smem>>
    %177 = arith.index_cast %176 : i32 to index
    %c0_132 = arith.constant 0 : index
    %178 = vector.load %arg1[%177, %c0_132] : memref<128x128xf32, #tpu.memory_space<vmem>>, vector<1x128xf32>
    %c44_133 = arith.constant 44 : index
    %c0_134 = arith.constant 0 : index
    %179 = vector.load %arg8[%c44_133, %c0_134] : memref<64x128xf32, #tpu.memory_space<vmem>>, vector<1x128xf32>
    tpu.vector_store %arg8[%c44_133, %c0_134], %178 {strides = array<i32>} : memref<64x128xf32, #tpu.memory_space<vmem>>, vector<1x128xf32>,
    %c45 = arith.constant 45 : index
    %180 = memref.load %arg0[%c45] : memref<64xi32, #tpu.memory_space<smem>>
    %181 = arith.index_cast %180 : i32 to index
    %c0_135 = arith.constant 0 : index
    %182 = vector.load %arg1[%181, %c0_135] : memref<128x128xf32, #tpu.memory_space<vmem>>, vector<1x128xf32>
    %c45_136 = arith.constant 45 : index
    %c0_137 = arith.constant 0 : index
    %183 = vector.load %arg8[%c45_136, %c0_137] : memref<64x128xf32, #tpu.memory_space<vmem>>, vector<1x128xf32>
    tpu.vector_store %arg8[%c45_136, %c0_137], %182 {strides = array<i32>} : memref<64x128xf32, #tpu.memory_space<vmem>>, vector<1x128xf32>,
    %c46 = arith.constant 46 : index
    %184 = memref.load %arg0[%c46] : memref<64xi32, #tpu.memory_space<smem>>
    %185 = arith.index_cast %184 : i32 to index
    %c0_138 = arith.constant 0 : index
    %186 = vector.load %arg1[%185, %c0_138] : memref<128x128xf32, #tpu.memory_space<vmem>>, vector<1x128xf32>
    %c46_139 = arith.constant 46 : index
    %c0_140 = arith.constant 0 : index
    %187 = vector.load %arg8[%c46_139, %c0_140] : memref<64x128xf32, #tpu.memory_space<vmem>>, vector<1x128xf32>
    tpu.vector_store %arg8[%c46_139, %c0_140], %186 {strides = array<i32>} : memref<64x128xf32, #tpu.memory_space<vmem>>, vector<1x128xf32>,
    %c47 = arith.constant 47 : index
    %188 = memref.load %arg0[%c47] : memref<64xi32, #tpu.memory_space<smem>>
    %189 = arith.index_cast %188 : i32 to index
    %c0_141 = arith.constant 0 : index
    %190 = vector.load %arg1[%189, %c0_141] : memref<128x128xf32, #tpu.memory_space<vmem>>, vector<1x128xf32>
    %c47_142 = arith.constant 47 : index
    %c0_143 = arith.constant 0 : index
    %191 = vector.load %arg8[%c47_142, %c0_143] : memref<64x128xf32, #tpu.memory_space<vmem>>, vector<1x128xf32>
    tpu.vector_store %arg8[%c47_142, %c0_143], %190 {strides = array<i32>} : memref<64x128xf32, #tpu.memory_space<vmem>>, vector<1x128xf32>,
    %c48 = arith.constant 48 : index
    %192 = memref.load %arg0[%c48] : memref<64xi32, #tpu.memory_space<smem>>
    %193 = arith.index_cast %192 : i32 to index
    %c0_144 = arith.constant 0 : index
    %194 = vector.load %arg1[%193, %c0_144] : memref<128x128xf32, #tpu.memory_space<vmem>>, vector<1x128xf32>
    %c48_145 = arith.constant 48 : index
    %c0_146 = arith.constant 0 : index
    %195 = vector.load %arg8[%c48_145, %c0_146] : memref<64x128xf32, #tpu.memory_space<vmem>>, vector<1x128xf32>
    tpu.vector_store %arg8[%c48_145, %c0_146], %194 {strides = array<i32>} : memref<64x128xf32, #tpu.memory_space<vmem>>, vector<1x128xf32>,
    %c49 = arith.constant 49 : index
    %196 = memref.load %arg0[%c49] : memref<64xi32, #tpu.memory_space<smem>>
    %197 = arith.index_cast %196 : i32 to index
    %c0_147 = arith.constant 0 : index
    %198 = vector.load %arg1[%197, %c0_147] : memref<128x128xf32, #tpu.memory_space<vmem>>, vector<1x128xf32>
    %c49_148 = arith.constant 49 : index
    %c0_149 = arith.constant 0 : index
    %199 = vector.load %arg8[%c49_148, %c0_149] : memref<64x128xf32, #tpu.memory_space<vmem>>, vector<1x128xf32>
    tpu.vector_store %arg8[%c49_148, %c0_149], %198 {strides = array<i32>} : memref<64x128xf32, #tpu.memory_space<vmem>>, vector<1x128xf32>,
    %c50 = arith.constant 50 : index
    %200 = memref.load %arg0[%c50] : memref<64xi32, #tpu.memory_space<smem>>
    %201 = arith.index_cast %200 : i32 to index
    %c0_150 = arith.constant 0 : index
    %202 = vector.load %arg1[%201, %c0_150] : memref<128x128xf32, #tpu.memory_space<vmem>>, vector<1x128xf32>
    %c50_151 = arith.constant 50 : index
    %c0_152 = arith.constant 0 : index
    %203 = vector.load %arg8[%c50_151, %c0_152] : memref<64x128xf32, #tpu.memory_space<vmem>>, vector<1x128xf32>
    tpu.vector_store %arg8[%c50_151, %c0_152], %202 {strides = array<i32>} : memref<64x128xf32, #tpu.memory_space<vmem>>, vector<1x128xf32>,
    %c51 = arith.constant 51 : index
    %204 = memref.load %arg0[%c51] : memref<64xi32, #tpu.memory_space<smem>>
    %205 = arith.index_cast %204 : i32 to index
    %c0_153 = arith.constant 0 : index
    %206 = vector.load %arg1[%205, %c0_153] : memref<128x128xf32, #tpu.memory_space<vmem>>, vector<1x128xf32>
    %c51_154 = arith.constant 51 : index
    %c0_155 = arith.constant 0 : index
    %207 = vector.load %arg8[%c51_154, %c0_155] : memref<64x128xf32, #tpu.memory_space<vmem>>, vector<1x128xf32>
    tpu.vector_store %arg8[%c51_154, %c0_155], %206 {strides = array<i32>} : memref<64x128xf32, #tpu.memory_space<vmem>>, vector<1x128xf32>,
    %c52 = arith.constant 52 : index
    %208 = memref.load %arg0[%c52] : memref<64xi32, #tpu.memory_space<smem>>
    %209 = arith.index_cast %208 : i32 to index
    %c0_156 = arith.constant 0 : index
    %210 = vector.load %arg1[%209, %c0_156] : memref<128x128xf32, #tpu.memory_space<vmem>>, vector<1x128xf32>
    %c52_157 = arith.constant 52 : index
    %c0_158 = arith.constant 0 : index
    %211 = vector.load %arg8[%c52_157, %c0_158] : memref<64x128xf32, #tpu.memory_space<vmem>>, vector<1x128xf32>
    tpu.vector_store %arg8[%c52_157, %c0_158], %210 {strides = array<i32>} : memref<64x128xf32, #tpu.memory_space<vmem>>, vector<1x128xf32>,
    %c53 = arith.constant 53 : index
    %212 = memref.load %arg0[%c53] : memref<64xi32, #tpu.memory_space<smem>>
    %213 = arith.index_cast %212 : i32 to index
    %c0_159 = arith.constant 0 : index
    %214 = vector.load %arg1[%213, %c0_159] : memref<128x128xf32, #tpu.memory_space<vmem>>, vector<1x128xf32>
    %c53_160 = arith.constant 53 : index
    %c0_161 = arith.constant 0 : index
    %215 = vector.load %arg8[%c53_160, %c0_161] : memref<64x128xf32, #tpu.memory_space<vmem>>, vector<1x128xf32>
    tpu.vector_store %arg8[%c53_160, %c0_161], %214 {strides = array<i32>} : memref<64x128xf32, #tpu.memory_space<vmem>>, vector<1x128xf32>,
    %c54 = arith.constant 54 : index
    %216 = memref.load %arg0[%c54] : memref<64xi32, #tpu.memory_space<smem>>
    %217 = arith.index_cast %216 : i32 to index
    %c0_162 = arith.constant 0 : index
    %218 = vector.load %arg1[%217, %c0_162] : memref<128x128xf32, #tpu.memory_space<vmem>>, vector<1x128xf32>
    %c54_163 = arith.constant 54 : index
    %c0_164 = arith.constant 0 : index
    %219 = vector.load %arg8[%c54_163, %c0_164] : memref<64x128xf32, #tpu.memory_space<vmem>>, vector<1x128xf32>
    tpu.vector_store %arg8[%c54_163, %c0_164], %218 {strides = array<i32>} : memref<64x128xf32, #tpu.memory_space<vmem>>, vector<1x128xf32>,
    %c55 = arith.constant 55 : index
    %220 = memref.load %arg0[%c55] : memref<64xi32, #tpu.memory_space<smem>>
    %221 = arith.index_cast %220 : i32 to index
    %c0_165 = arith.constant 0 : index
    %222 = vector.load %arg1[%221, %c0_165] : memref<128x128xf32, #tpu.memory_space<vmem>>, vector<1x128xf32>
    %c55_166 = arith.constant 55 : index
    %c0_167 = arith.constant 0 : index
    %223 = vector.load %arg8[%c55_166, %c0_167] : memref<64x128xf32, #tpu.memory_space<vmem>>, vector<1x128xf32>
    tpu.vector_store %arg8[%c55_166, %c0_167], %222 {strides = array<i32>} : memref<64x128xf32, #tpu.memory_space<vmem>>, vector<1x128xf32>,
    %c56 = arith.constant 56 : index
    %224 = memref.load %arg0[%c56] : memref<64xi32, #tpu.memory_space<smem>>
    %225 = arith.index_cast %224 : i32 to index
    %c0_168 = arith.constant 0 : index
    %226 = vector.load %arg1[%225, %c0_168] : memref<128x128xf32, #tpu.memory_space<vmem>>, vector<1x128xf32>
    %c56_169 = arith.constant 56 : index
    %c0_170 = arith.constant 0 : index
    %227 = vector.load %arg8[%c56_169, %c0_170] : memref<64x128xf32, #tpu.memory_space<vmem>>, vector<1x128xf32>
    tpu.vector_store %arg8[%c56_169, %c0_170], %226 {strides = array<i32>} : memref<64x128xf32, #tpu.memory_space<vmem>>, vector<1x128xf32>,
    %c57 = arith.constant 57 : index
    %228 = memref.load %arg0[%c57] : memref<64xi32, #tpu.memory_space<smem>>
    %229 = arith.index_cast %228 : i32 to index
    %c0_171 = arith.constant 0 : index
    %230 = vector.load %arg1[%229, %c0_171] : memref<128x128xf32, #tpu.memory_space<vmem>>, vector<1x128xf32>
    %c57_172 = arith.constant 57 : index
    %c0_173 = arith.constant 0 : index
    %231 = vector.load %arg8[%c57_172, %c0_173] : memref<64x128xf32, #tpu.memory_space<vmem>>, vector<1x128xf32>
    tpu.vector_store %arg8[%c57_172, %c0_173], %230 {strides = array<i32>} : memref<64x128xf32, #tpu.memory_space<vmem>>, vector<1x128xf32>,
    %c58 = arith.constant 58 : index
    %232 = memref.load %arg0[%c58] : memref<64xi32, #tpu.memory_space<smem>>
    %233 = arith.index_cast %232 : i32 to index
    %c0_174 = arith.constant 0 : index
    %234 = vector.load %arg1[%233, %c0_174] : memref<128x128xf32, #tpu.memory_space<vmem>>, vector<1x128xf32>
    %c58_175 = arith.constant 58 : index
    %c0_176 = arith.constant 0 : index
    %235 = vector.load %arg8[%c58_175, %c0_176] : memref<64x128xf32, #tpu.memory_space<vmem>>, vector<1x128xf32>
    tpu.vector_store %arg8[%c58_175, %c0_176], %234 {strides = array<i32>} : memref<64x128xf32, #tpu.memory_space<vmem>>, vector<1x128xf32>,
    %c59 = arith.constant 59 : index
    %236 = memref.load %arg0[%c59] : memref<64xi32, #tpu.memory_space<smem>>
    %237 = arith.index_cast %236 : i32 to index
    %c0_177 = arith.constant 0 : index
    %238 = vector.load %arg1[%237, %c0_177] : memref<128x128xf32, #tpu.memory_space<vmem>>, vector<1x128xf32>
    %c59_178 = arith.constant 59 : index
    %c0_179 = arith.constant 0 : index
    %239 = vector.load %arg8[%c59_178, %c0_179] : memref<64x128xf32, #tpu.memory_space<vmem>>, vector<1x128xf32>
    tpu.vector_store %arg8[%c59_178, %c0_179], %238 {strides = array<i32>} : memref<64x128xf32, #tpu.memory_space<vmem>>, vector<1x128xf32>,
    %c60 = arith.constant 60 : index
    %240 = memref.load %arg0[%c60] : memref<64xi32, #tpu.memory_space<smem>>
    %241 = arith.index_cast %240 : i32 to index
    %c0_180 = arith.constant 0 : index
    %242 = vector.load %arg1[%241, %c0_180] : memref<128x128xf32, #tpu.memory_space<vmem>>, vector<1x128xf32>
    %c60_181 = arith.constant 60 : index
    %c0_182 = arith.constant 0 : index
    %243 = vector.load %arg8[%c60_181, %c0_182] : memref<64x128xf32, #tpu.memory_space<vmem>>, vector<1x128xf32>
    tpu.vector_store %arg8[%c60_181, %c0_182], %242 {strides = array<i32>} : memref<64x128xf32, #tpu.memory_space<vmem>>, vector<1x128xf32>,
    %c61 = arith.constant 61 : index
    %244 = memref.load %arg0[%c61] : memref<64xi32, #tpu.memory_space<smem>>
    %245 = arith.index_cast %244 : i32 to index
    %c0_183 = arith.constant 0 : index
    %246 = vector.load %arg1[%245, %c0_183] : memref<128x128xf32, #tpu.memory_space<vmem>>, vector<1x128xf32>
    %c61_184 = arith.constant 61 : index
    %c0_185 = arith.constant 0 : index
    %247 = vector.load %arg8[%c61_184, %c0_185] : memref<64x128xf32, #tpu.memory_space<vmem>>, vector<1x128xf32>
    tpu.vector_store %arg8[%c61_184, %c0_185], %246 {strides = array<i32>} : memref<64x128xf32, #tpu.memory_space<vmem>>, vector<1x128xf32>,
    %c62 = arith.constant 62 : index
    %248 = memref.load %arg0[%c62] : memref<64xi32, #tpu.memory_space<smem>>
    %249 = arith.index_cast %248 : i32 to index
    %c0_186 = arith.constant 0 : index
    %250 = vector.load %arg1[%249, %c0_186] : memref<128x128xf32, #tpu.memory_space<vmem>>, vector<1x128xf32>
    %c62_187 = arith.constant 62 : index
    %c0_188 = arith.constant 0 : index
    %251 = vector.load %arg8[%c62_187, %c0_188] : memref<64x128xf32, #tpu.memory_space<vmem>>, vector<1x128xf32>
    tpu.vector_store %arg8[%c62_187, %c0_188], %250 {strides = array<i32>} : memref<64x128xf32, #tpu.memory_space<vmem>>, vector<1x128xf32>,
    %c63 = arith.constant 63 : index
    %252 = memref.load %arg0[%c63] : memref<64xi32, #tpu.memory_space<smem>>
    %253 = arith.index_cast %252 : i32 to index
    %c0_189 = arith.constant 0 : index
    %254 = vector.load %arg1[%253, %c0_189] : memref<128x128xf32, #tpu.memory_space<vmem>>, vector<1x128xf32>
    %c63_190 = arith.constant 63 : index
    %c0_191 = arith.constant 0 : index
    %255 = vector.load %arg8[%c63_190, %c0_191] : memref<64x128xf32, #tpu.memory_space<vmem>>, vector<1x128xf32>
    tpu.vector_store %arg8[%c63_190, %c0_191], %254 {strides = array<i32>} : memref<64x128xf32, #tpu.memory_space<vmem>>, vector<1x128xf32>,
    %c0_192 = arith.constant 0 : index
    %c0_193 = arith.constant 0 : index
    %256 = vector.load %arg8[%c0_192, %c0_193] : memref<64x128xf32, #tpu.memory_space<vmem>>, vector<64x128xf32>
    %257 = arith.truncf %256 : vector<64x128xf32> to vector<64x128xbf16>
    %c0_194 = arith.constant 0 : index
    %c0_195 = arith.constant 0 : index
    %258 = vector.load %arg2[%c0_194, %c0_195] : memref<128x128xbf16, #tpu.memory_space<vmem>>, vector<128x128xbf16>
    %cst = arith.constant dense<0.000000e+00> : vector<64x128xf32>
    %259 = tpu.matmul %257, %258, %cst {dimension_numbers = #tpu.dot_dimension_numbers<[1], [0], [0], [1], [0, 0, 1, 1], [], []>} : vector<64x128xbf16>, vector<128x128xbf16>, vector<64x128xf32> -> vector<64x128xf32>
    %c0_196 = arith.constant 0 : index
    %c0_197 = arith.constant 0 : index
    %260 = vector.load %arg4[%c0_196, %c0_197] : memref<1x128xf32, #tpu.memory_space<vmem>>, vector<1x128xf32>
    %261 = vector.broadcast %260 : vector<1x128xf32> to vector<64x128xf32>
    %262 = arith.addf %259, %261 : vector<64x128xf32>
    %263 = vector.shape_cast %262 : vector<64x128xf32> to vector<8x8x128xf32>
    %c0_198 = arith.constant 0 : index
    %c0_199 = arith.constant 0 : index
    %264 = vector.load %arg3[%c0_198, %c0_199] : memref<128x128xbf16, #tpu.memory_space<vmem>>, vector<128x128xbf16>
    %cst_200 = arith.constant 0.000000e+00 : f32
    %265 = vector.broadcast %cst_200 : f32 to vector<8x128xf32>
    %266 = vector.extract_strided_slice %263 {offsets = [0, 0, 0], sizes = [1, 8, 128], strides = [1, 1, 1]} : vector<8x8x128xf32> to vector<1x8x128xf32>
    %267 = vector.shape_cast %266 : vector<1x8x128xf32> to vector<8x128xf32>
    %268 = arith.truncf %265 : vector<8x128xf32> to vector<8x128xbf16>
    %cst_201 = arith.constant dense<0.000000e+00> : vector<8x128xf32>
    %269 = tpu.matmul %268, %264, %cst_201 {dimension_numbers = #tpu.dot_dimension_numbers<[1], [0], [0], [1], [0, 0, 1, 1], [], []>} : vector<8x128xbf16>, vector<128x128xbf16>, vector<8x128xf32> -> vector<8x128xf32>
    %270 = arith.addf %267, %269 : vector<8x128xf32>
    %271 = math.tanh %270 : vector<8x128xf32>
    %c0_202 = arith.constant 0 : index
    %c0_203 = arith.constant 0 : index
    %272 = vector.load %arg9[%c0_202, %c0_203] : memref<64x128xf32, #tpu.memory_space<vmem>>, vector<8x128xf32>
    tpu.vector_store %arg9[%c0_202, %c0_203], %271 {strides = array<i32>} : memref<64x128xf32, #tpu.memory_space<vmem>>, vector<8x128xf32>,
    %273 = vector.extract_strided_slice %263 {offsets = [1, 0, 0], sizes = [1, 8, 128], strides = [1, 1, 1]} : vector<8x8x128xf32> to vector<1x8x128xf32>
    %274 = vector.shape_cast %273 : vector<1x8x128xf32> to vector<8x128xf32>
    %275 = arith.truncf %271 : vector<8x128xf32> to vector<8x128xbf16>
    %cst_204 = arith.constant dense<0.000000e+00> : vector<8x128xf32>
    %276 = tpu.matmul %275, %264, %cst_204 {dimension_numbers = #tpu.dot_dimension_numbers<[1], [0], [0], [1], [0, 0, 1, 1], [], []>} : vector<8x128xbf16>, vector<128x128xbf16>, vector<8x128xf32> -> vector<8x128xf32>
    %277 = arith.addf %274, %276 : vector<8x128xf32>
    %278 = math.tanh %277 : vector<8x128xf32>
    %c8_205 = arith.constant 8 : index
    %c0_206 = arith.constant 0 : index
    %279 = vector.load %arg9[%c8_205, %c0_206] : memref<64x128xf32, #tpu.memory_space<vmem>>, vector<8x128xf32>
    tpu.vector_store %arg9[%c8_205, %c0_206], %278 {strides = array<i32>} : memref<64x128xf32, #tpu.memory_space<vmem>>, vector<8x128xf32>,
    %280 = vector.extract_strided_slice %263 {offsets = [2, 0, 0], sizes = [1, 8, 128], strides = [1, 1, 1]} : vector<8x8x128xf32> to vector<1x8x128xf32>
    %281 = vector.shape_cast %280 : vector<1x8x128xf32> to vector<8x128xf32>
    %282 = arith.truncf %278 : vector<8x128xf32> to vector<8x128xbf16>
    %cst_207 = arith.constant dense<0.000000e+00> : vector<8x128xf32>
    %283 = tpu.matmul %282, %264, %cst_207 {dimension_numbers = #tpu.dot_dimension_numbers<[1], [0], [0], [1], [0, 0, 1, 1], [], []>} : vector<8x128xbf16>, vector<128x128xbf16>, vector<8x128xf32> -> vector<8x128xf32>
    %284 = arith.addf %281, %283 : vector<8x128xf32>
    %285 = math.tanh %284 : vector<8x128xf32>
    %c16_208 = arith.constant 16 : index
    %c0_209 = arith.constant 0 : index
    %286 = vector.load %arg9[%c16_208, %c0_209] : memref<64x128xf32, #tpu.memory_space<vmem>>, vector<8x128xf32>
    tpu.vector_store %arg9[%c16_208, %c0_209], %285 {strides = array<i32>} : memref<64x128xf32, #tpu.memory_space<vmem>>, vector<8x128xf32>,
    %287 = vector.extract_strided_slice %263 {offsets = [3, 0, 0], sizes = [1, 8, 128], strides = [1, 1, 1]} : vector<8x8x128xf32> to vector<1x8x128xf32>
    %288 = vector.shape_cast %287 : vector<1x8x128xf32> to vector<8x128xf32>
    %289 = arith.truncf %285 : vector<8x128xf32> to vector<8x128xbf16>
    %cst_210 = arith.constant dense<0.000000e+00> : vector<8x128xf32>
    %290 = tpu.matmul %289, %264, %cst_210 {dimension_numbers = #tpu.dot_dimension_numbers<[1], [0], [0], [1], [0, 0, 1, 1], [], []>} : vector<8x128xbf16>, vector<128x128xbf16>, vector<8x128xf32> -> vector<8x128xf32>
    %291 = arith.addf %288, %290 : vector<8x128xf32>
    %292 = math.tanh %291 : vector<8x128xf32>
    %c24_211 = arith.constant 24 : index
    %c0_212 = arith.constant 0 : index
    %293 = vector.load %arg9[%c24_211, %c0_212] : memref<64x128xf32, #tpu.memory_space<vmem>>, vector<8x128xf32>
    tpu.vector_store %arg9[%c24_211, %c0_212], %292 {strides = array<i32>} : memref<64x128xf32, #tpu.memory_space<vmem>>, vector<8x128xf32>,
    %294 = vector.extract_strided_slice %263 {offsets = [4, 0, 0], sizes = [1, 8, 128], strides = [1, 1, 1]} : vector<8x8x128xf32> to vector<1x8x128xf32>
    %295 = vector.shape_cast %294 : vector<1x8x128xf32> to vector<8x128xf32>
    %296 = arith.truncf %292 : vector<8x128xf32> to vector<8x128xbf16>
    %cst_213 = arith.constant dense<0.000000e+00> : vector<8x128xf32>
    %297 = tpu.matmul %296, %264, %cst_213 {dimension_numbers = #tpu.dot_dimension_numbers<[1], [0], [0], [1], [0, 0, 1, 1], [], []>} : vector<8x128xbf16>, vector<128x128xbf16>, vector<8x128xf32> -> vector<8x128xf32>
    %298 = arith.addf %295, %297 : vector<8x128xf32>
    %299 = math.tanh %298 : vector<8x128xf32>
    %c32_214 = arith.constant 32 : index
    %c0_215 = arith.constant 0 : index
    %300 = vector.load %arg9[%c32_214, %c0_215] : memref<64x128xf32, #tpu.memory_space<vmem>>, vector<8x128xf32>
    tpu.vector_store %arg9[%c32_214, %c0_215], %299 {strides = array<i32>} : memref<64x128xf32, #tpu.memory_space<vmem>>, vector<8x128xf32>,
    %301 = vector.extract_strided_slice %263 {offsets = [5, 0, 0], sizes = [1, 8, 128], strides = [1, 1, 1]} : vector<8x8x128xf32> to vector<1x8x128xf32>
    %302 = vector.shape_cast %301 : vector<1x8x128xf32> to vector<8x128xf32>
    %303 = arith.truncf %299 : vector<8x128xf32> to vector<8x128xbf16>
    %cst_216 = arith.constant dense<0.000000e+00> : vector<8x128xf32>
    %304 = tpu.matmul %303, %264, %cst_216 {dimension_numbers = #tpu.dot_dimension_numbers<[1], [0], [0], [1], [0, 0, 1, 1], [], []>} : vector<8x128xbf16>, vector<128x128xbf16>, vector<8x128xf32> -> vector<8x128xf32>
    %305 = arith.addf %302, %304 : vector<8x128xf32>
    %306 = math.tanh %305 : vector<8x128xf32>
    %c40_217 = arith.constant 40 : index
    %c0_218 = arith.constant 0 : index
    %307 = vector.load %arg9[%c40_217, %c0_218] : memref<64x128xf32, #tpu.memory_space<vmem>>, vector<8x128xf32>
    tpu.vector_store %arg9[%c40_217, %c0_218], %306 {strides = array<i32>} : memref<64x128xf32, #tpu.memory_space<vmem>>, vector<8x128xf32>,
    %308 = vector.extract_strided_slice %263 {offsets = [6, 0, 0], sizes = [1, 8, 128], strides = [1, 1, 1]} : vector<8x8x128xf32> to vector<1x8x128xf32>
    %309 = vector.shape_cast %308 : vector<1x8x128xf32> to vector<8x128xf32>
    %310 = arith.truncf %306 : vector<8x128xf32> to vector<8x128xbf16>
    %cst_219 = arith.constant dense<0.000000e+00> : vector<8x128xf32>
    %311 = tpu.matmul %310, %264, %cst_219 {dimension_numbers = #tpu.dot_dimension_numbers<[1], [0], [0], [1], [0, 0, 1, 1], [], []>} : vector<8x128xbf16>, vector<128x128xbf16>, vector<8x128xf32> -> vector<8x128xf32>
    %312 = arith.addf %309, %311 : vector<8x128xf32>
    %313 = math.tanh %312 : vector<8x128xf32>
    %c48_220 = arith.constant 48 : index
    %c0_221 = arith.constant 0 : index
    %314 = vector.load %arg9[%c48_220, %c0_221] : memref<64x128xf32, #tpu.memory_space<vmem>>, vector<8x128xf32>
    tpu.vector_store %arg9[%c48_220, %c0_221], %313 {strides = array<i32>} : memref<64x128xf32, #tpu.memory_space<vmem>>, vector<8x128xf32>,
    %315 = vector.extract_strided_slice %263 {offsets = [7, 0, 0], sizes = [1, 8, 128], strides = [1, 1, 1]} : vector<8x8x128xf32> to vector<1x8x128xf32>
    %316 = vector.shape_cast %315 : vector<1x8x128xf32> to vector<8x128xf32>
    %317 = arith.truncf %313 : vector<8x128xf32> to vector<8x128xbf16>
    %cst_222 = arith.constant dense<0.000000e+00> : vector<8x128xf32>
    %318 = tpu.matmul %317, %264, %cst_222 {dimension_numbers = #tpu.dot_dimension_numbers<[1], [0], [0], [1], [0, 0, 1, 1], [], []>} : vector<8x128xbf16>, vector<128x128xbf16>, vector<8x128xf32> -> vector<8x128xf32>
    %319 = arith.addf %316, %318 : vector<8x128xf32>
    %320 = math.tanh %319 : vector<8x128xf32>
    %c56_223 = arith.constant 56 : index
    %c0_224 = arith.constant 0 : index
    %321 = vector.load %arg9[%c56_223, %c0_224] : memref<64x128xf32, #tpu.memory_space<vmem>>, vector<8x128xf32>
    tpu.vector_store %arg9[%c56_223, %c0_224], %320 {strides = array<i32>} : memref<64x128xf32, #tpu.memory_space<vmem>>, vector<8x128xf32>,
    %c0_225 = arith.constant 0 : index
    %c0_226 = arith.constant 0 : index
    %322 = vector.load %arg9[%c0_225, %c0_226] : memref<64x128xf32, #tpu.memory_space<vmem>>, vector<64x128xf32>
    %323 = arith.truncf %322 : vector<64x128xf32> to vector<64x128xbf16>
    %c0_227 = arith.constant 0 : index
    %c0_228 = arith.constant 0 : index
    %324 = vector.load %arg5[%c0_227, %c0_228] : memref<128x128xbf16, #tpu.memory_space<vmem>>, vector<128x128xbf16>
    %cst_229 = arith.constant dense<0.000000e+00> : vector<64x128xf32>
    %325 = tpu.matmul %323, %324, %cst_229 {dimension_numbers = #tpu.dot_dimension_numbers<[1], [0], [0], [1], [0, 0, 1, 1], [], []>} : vector<64x128xbf16>, vector<128x128xbf16>, vector<64x128xf32> -> vector<64x128xf32>
    %c0_230 = arith.constant 0 : index
    %c0_231 = arith.constant 0 : index
    %326 = vector.load %arg6[%c0_230, %c0_231] : memref<1x128xf32, #tpu.memory_space<vmem>>, vector<1x128xf32>
    %327 = vector.broadcast %326 : vector<1x128xf32> to vector<64x128xf32>
    %328 = arith.addf %325, %327 : vector<64x128xf32>
    %c0_232 = arith.constant 0 : index
    %c0_233 = arith.constant 0 : index
    %329 = vector.load %arg7[%c0_232, %c0_233] : memref<64x128xf32, #tpu.memory_space<vmem>>, vector<64x128xf32>
    tpu.vector_store %arg7[%c0_232, %c0_233], %328 {strides = array<i32>} : memref<64x128xf32, #tpu.memory_space<vmem>>, vector<64x128xf32>,
    return
  }
}

</mosaic_0001>

<bundles_post_ra>
// kernel: tpu_custom_call.1
= control target key start
LH: loop header
LB: loop body
LE: loop exit
PB: predicated region body
PF: predicated region fallthrough
CT: control target
= control target key end

     0   :  { %12 = vsyncpa [#allocation7], 0  ;;  %s2152_s0 = inlined_call_operand.hbm [shape: s32[64], index: 0, kind: input, shape index: {}]   ;;  %s2153_s1 = inlined_call_operand.hbm [shape: f32[128,128], index: 1, kind: input, shape index: {}]   ;;  %s2154_s2 = inlined_call_operand.hbm [shape: bf16[128,128], index: 2, kind: input, shape index: {}]   ;;  %s2155_s3 = inlined_call_operand.hbm [shape: bf16[128,128], index: 3, kind: input, shape index: {}]   ;;  %s2156_s4 = inlined_call_operand.vmem [shape: f32[1,128], index: 4, kind: input, shape index: {}]   ;;  %s2157_s5 = inlined_call_operand.hbm [shape: bf16[128,128], index: 5, kind: input, shape index: {}]   ;;  %s2158_s6 = inlined_call_operand.vmem [shape: f32[1,128], index: 6, kind: input, shape index: {}]   ;;  %s2159_s7 = inlined_call_operand.hbm [shape: f32[64,128], index: 7, kind: output, shape index: {}]  }
   0x1   :  { %13 = vsyncpa [#allocation5], 0 }
   0x2   :  { %14 = vsyncpa [#allocation10], 0 }
   0x3   :  { %15 = vsyncpa [#allocation13], 0 }
   0x4   :  { %16 = vsyncpa [#allocation6], 0  ;;  %s1731_s24 = smov [#allocation9]   ;;  %s1601_s28 = scalar_lea.hbm %s2154_s2, 1024 }
   0x5   :  { %s42_s25 = sshll.u32 %s1731_s24, 4  ;;  %p1602_p0 = scmp.ne.s32.totalorder %s2154_s2, %s1601_s28  ;;  %s43_s25 = int_to_ptr.vmem [resolvable:$true] %s42_s25 }
   0x6   :  { %p1605_p1 = scmp.lt.u32.totalorder %s1601_s28, %s2154_s2 }
   0x8   :  { %p1607_p2 = pnand %p1605_p1, %p1602_p0 }
   0xa   :  { %1610 = shalt.err (!%p1607_p2)
}
   0xb   :  { %s1611_s10 = scalar_lea.vmem %s43_s25, 1024  ;;  %p1616_p4 = scmp.lt.s32.totalorder %s43_s25, %s43_s25 }
   0xc   :  { %p1612_p3 = scmp.ne.s32.totalorder %s43_s25, %s1611_s10  ;;  %p1617_p5 = scmp.lt.s32.totalorder %s1611_s10, %s1611_s10 }
   0xe   :  { %p1618_p6 = por %p1617_p5, %p1616_p4 }
  0x10   :  { %p1619_p7 = pnand %p1618_p6, %p1612_p3 }
  0x12   :  { %1622 = shalt.err (!%p1619_p7)
}
  0x13   :  { %s1732_s11 = smov 64   ;;  %s1733_s12 = smov 4  }
  0x14   :  { %48 = dma.hbm_to_vmem [thread:$0]  %s2154_s2, 1024, %s43_s25, [#allocation10], %s1732_s11, %s1732_s11, %s1733_s12  }
  0x15   :  { %s1623_s17 = scalar_lea.hbm %s2152_s0, 16 }
  0x16   :  { %p1624_p8 = scmp.ne.s32.totalorder %s2152_s0, %s1623_s17  ;;  %p1627_p9 = scmp.lt.u32.totalorder %s1623_s17, %s2152_s0 }
  0x18   :  { %p1629_p10 = pnand %p1627_p9, %p1624_p8 }
  0x1a   :  { %1632 = shalt.err (!%p1629_p10)
}
  0x1b   :  { %s1734_s22 = smov [#allocation4]   ;;  %s1735_s2 = smov [#allocation8]  }
  0x1c   :  { %24 = dma.hbm_to_smem %s2152_s0, 16, %s1734_s22, [#allocation7]  }
  0x1d   :  { %s30_s25 = sshll.u32 %s1735_s2, 4  ;;  %s1633_s28 = scalar_lea.hbm %s2153_s1, 2048  ;;  %s31_s25 = int_to_ptr.vmem [resolvable:$true] %s30_s25 }
  0x1e   :  { %p1634_p11 = scmp.ne.s32.totalorder %s2153_s1, %s1633_s28  ;;  %p1637_p12 = scmp.lt.u32.totalorder %s1633_s28, %s2153_s1 }
  0x20   :  { %p1639_p13 = pnand %p1637_p12, %p1634_p11 }
  0x22   :  { %1642 = shalt.err (!%p1639_p13)
}
  0x23   :  { %s1643_s10 = scalar_lea.vmem %s31_s25, 2048  ;;  %p1648_p1 = scmp.lt.s32.totalorder %s31_s25, %s31_s25 }
  0x24   :  { %p1644_p0 = scmp.ne.s32.totalorder %s31_s25, %s1643_s10  ;;  %p1649_p2 = scmp.lt.s32.totalorder %s1643_s10, %s1643_s10 }
  0x26   :  { %p1650_p3 = por %p1649_p2, %p1648_p1 }
  0x28   :  { %p1651_p4 = pnand %p1650_p3, %p1644_p0 }
  0x2a   :  { %1654 = shalt.err (!%p1651_p4)
}
  0x2b   :  { %s1736_s0 = smov 128   ;;  %s1737_s13 = smov 8  }
  0x2c   :  { %36 = dma.hbm_to_vmem [thread:$0]  %s2153_s1, 2048, %s31_s25, [#allocation5], %s1736_s0, %s1736_s0, %s1737_s13  }
  0x2d   :  { %s1738_s16 = smov [#allocation11]   ;;  %s1739_s18 = smov [#allocation12]  }
  0x2e   :  { %s54_s17 = sshll.u32 %s1738_s16, 4  ;;  %s68_s19 = sshll.u32 %s1739_s18, 4  ;;  %s55_s17 = int_to_ptr.vmem [resolvable:$true] %s54_s17  ;;  %s69_s19 = int_to_ptr.vmem [resolvable:$true] %s68_s19 }
  0x2f   :  { %s1655_s22 = scalar_lea.hbm %s2155_s3, 1024 }
  0x30   :  { %p1656_p5 = scmp.ne.s32.totalorder %s2155_s3, %s1655_s22  ;;  %p1659_p6 = scmp.lt.u32.totalorder %s1655_s22, %s2155_s3 }
  0x32   :  { %p1661_p7 = pnand %p1659_p6, %p1656_p5 }
  0x34   :  { %1664 = shalt.err (!%p1661_p7)
}
  0x35   :  { %s1665_s1 = scalar_lea.vmem %s55_s17, 1024  ;;  %p1670_p9 = scmp.lt.s32.totalorder %s55_s17, %s55_s17 }
  0x36   :  { %p1666_p8 = scmp.ne.s32.totalorder %s55_s17, %s1665_s1  ;;  %p1671_p10 = scmp.lt.s32.totalorder %s1665_s1, %s1665_s1 }
  0x38   :  { %p1672_p11 = por %p1671_p10, %p1670_p9 }
  0x3a   :  { %p1673_p12 = pnand %p1672_p11, %p1666_p8 }
  0x3c   :  { %1676 = shalt.err (!%p1673_p12)
}
  0x3d   :  { %60 = dma.hbm_to_vmem [thread:$0]  %s2155_s3, 1024, %s55_s17, [#allocation10], %s1732_s11, %s1732_s11, %s1733_s12  }
  0x3e   :  { %s1677_s30 = scalar_lea.hbm %s2157_s5, 1024 }
  0x3f   :  { %p1678_p13 = scmp.ne.s32.totalorder %s2157_s5, %s1677_s30  ;;  %p1681_p0 = scmp.lt.u32.totalorder %s1677_s30, %s2157_s5 }
  0x41   :  { %p1683_p1 = pnand %p1681_p0, %p1678_p13 }
  0x43   :  { %1686 = shalt.err (!%p1683_p1)
}
  0x44   :  { %s1687_s15 = scalar_lea.vmem %s69_s19, 1024  ;;  %p1692_p3 = scmp.lt.s32.totalorder %s69_s19, %s69_s19 }
  0x45   :  { %p1688_p2 = scmp.ne.s32.totalorder %s69_s19, %s1687_s15  ;;  %p1693_p4 = scmp.lt.s32.totalorder %s1687_s15, %s1687_s15 }
  0x47   :  { %p1694_p5 = por %p1693_p4, %p1692_p3 }
  0x49   :  { %p1695_p6 = pnand %p1694_p5, %p1688_p2 }
  0x4b   :  { %1698 = shalt.err (!%p1695_p6)
}
  0x4c   :  { %74 = dma.hbm_to_vmem [thread:$0]  %s2157_s5, 1024, %s69_s19, [#allocation13], %s1732_s11, %s1732_s11, %s1733_s12  }
  0x4d   :  { %1721 = dma.done.wait [#allocation7], 16  }
  0x4e   :  { %1722 = vsyncadd [#allocation7], 4294967280 }
  0x4f   :  { %1723 = dma.done.wait [#allocation5], 2048  }
  0x50   :  { %1724 = vsyncadd [#allocation5], 4294965248 }
  0x51   :  { %1725 = dma.done.wait [#allocation10], 2048  }
  0x52   :  { %1726 = vsyncadd [#allocation10], 4294965248 }
  0x53   :  { %1727 = dma.done.wait [#allocation13], 1024  }
  0x54   :  { %1728 = vsyncadd [#allocation13], 4294966272 }
  0x55   :  { %92 = sfence }
  0x56   :  { %v1559_v0 = vld [vmem:[#allocation9] sm:$0xff]   ;;  %v1740_v1 = vmov 0.0   ;;  %v1561_v3 = vld [vmem:[#allocation9 + $0x8] sm:$0xff]   ;;  %vm1741_vm0 = vmmov 0   ;;  %v1563_v5 = vld [vmem:[#allocation9 + $0x10] sm:$0xff]   ;;  %s94_s5 = sld [smem:[#allocation4]] }
  0x57   :  { %1362 = vmatprep.subr.bf16.mxu1 %v1740_v1  ;;  %v1857_v2 = vld [vmem:[#allocation11] sm:$0xff]   ;;  %1338 = vmatprep.subr.bf16.mxu0 %v1559_v0  ;;  %v1862_v4 = vld [vmem:[#allocation11 + $0x8] sm:$0xff]   ;;  %v1866_v6 = vld [vmem:[#allocation11 + $0x10] sm:$0xff]   ;;  %s1153_s11 = sld [smem:[#allocation4 + $0x1]]  ;;  %s1154_s12 = sld [smem:[#allocation4 + $0x2]]  ;;  %v1742_v29 = vmov 0  }
  0x58   :  { %1378 = vmatprep.mubr.msk.bf16.mxu1 %vm1741_vm0, %v1740_v1  ;;  %1339 = vmatpush3.bf16.msra.mxu0 %v1559_v0  ;;  %v1565_v7 = vld [vmem:[#allocation9 + $0x18] sm:$0xff]   ;;  %v1567_v9 = vld [vmem:[#allocation9 + $0x20] sm:$0xff]   ;;  %v1569_v11 = vld [vmem:[#allocation9 + $0x28] sm:$0xff]   ;;  %s1879_s17 = sld [smem:[#allocation4 + $0x3]]  ;;  %s1881_s18 = sld [smem:[#allocation4 + $0x4]] }
  0x59   :  { %1363 = vmatpush3.bf16.msra.mxu1 %v1857_v2  ;;  %1340 = vmatprep.subr.bf16.mxu0 %v1561_v3  ;;  %v1870_v8 = vld [vmem:[#allocation11 + $0x18] sm:$0xff]   ;;  %v1873_v10 = vld [vmem:[#allocation11 + $0x20] sm:$0xff]   ;;  %v1877_v12 = vld [vmem:[#allocation11 + $0x28] sm:$0xff]   ;;  %s1883_s19 = sld [smem:[#allocation4 + $0x5]]  ;;  %s1886_s20 = sld [smem:[#allocation4 + $0x6]] }
  0x5a   :  { %1364 = vmatprep.subr.bf16.mxu1 %v1740_v1  ;;  %v1571_v13 = vld [vmem:[#allocation9 + $0x30] sm:$0xff]   ;;  %s1888_s21 = sld [smem:[#allocation4 + $0x7]]  ;;  %s1891_s22 = sld [smem:[#allocation4 + $0x8]]  ;;  %v1573_v15 = vld [vmem:[#allocation9 + $0x38] sm:$0xff]  }
  0x5b   :  { %s1893_s23 = sld [smem:[#allocation4 + $0x9]]  ;;  %v1895_v14 = vld [vmem:[#allocation11 + $0x30] sm:$0xff]   ;;  %s1897_s24 = sld [smem:[#allocation4 + $0xa]]  ;;  %v1904_v20 = vld [vmem:[#allocation11 + $0x38] sm:$0xff]  }
  0x5c   :  { %1341 = vmatpush3.bf16.msra.mxu0 %v1561_v3  ;;  %s1899_s2 = sld [smem:[#allocation4 + $0xb]]  ;;  %s95_s26 = scalar_lea.vmem [#allocation8], %s94_s5 }
  0x5d   :  { %1365 = vmatpush3.bf16.msra.mxu1 %v1862_v4  ;;  %1342 = vmatprep.subr.bf16.mxu0 %v1563_v5  ;;  %v96_v16 = vld [vmem:[%s95_s26] sm:$0x1]  ;;  %s99_s1 = scalar_lea.vmem [#allocation8], %s1153_s11  ;;  %s103_s25 = scalar_lea.vmem [#allocation8], %s1154_s12 }
  0x5e   :  { %1366 = vmatprep.subr.bf16.mxu1 %v1740_v1  ;;  %v100_v17 = vld [vmem:[%s99_s1] sm:$0x1]  ;;  %97 = vst [vmem:[#allocation2] sm:$0x1] %v96_v16  ;;  %s107_s27 = scalar_lea.vmem [#allocation8], %s1879_s17  ;;  %s111_s28 = scalar_lea.vmem [#allocation8], %s1881_s18 }
  0x5f   :  { %101 = vst [vmem:[#allocation2 + $0x1] sm:$0x1] %v100_v17  ;;  %v104_v18 = vld [vmem:[%s103_s25] sm:$0x1]  ;;  %s115_s29 = scalar_lea.vmem [#allocation8], %s1883_s19  ;;  %s119_s30 = scalar_lea.vmem [#allocation8], %s1886_s20 }
  0x60   :  { %1343 = vmatpush3.bf16.msra.mxu0 %v1563_v5  ;;  %v108_v19 = vld [vmem:[%s107_s27] sm:$0x1]  ;;  %105 = vst [vmem:[#allocation2 + $0x2] sm:$0x1] %v104_v18  ;;  %s123_s8 = scalar_lea.vmem [#allocation8], %s1888_s21  ;;  %s127_s9 = scalar_lea.vmem [#allocation8], %s1891_s22 }
  0x61   :  { %1367 = vmatpush3.bf16.msra.mxu1 %v1866_v6  ;;  %1344 = vmatprep.subr.bf16.mxu0 %v1565_v7  ;;  %109 = vst [vmem:[#allocation2 + $0x3] sm:$0x1] %v108_v19  ;;  %v112_v21 = vld [vmem:[%s111_s28] sm:$0x1]  ;;  %s131_s10 = scalar_lea.vmem [#allocation8], %s1893_s23  ;;  %s135_s14 = scalar_lea.vmem [#allocation8], %s1897_s24 }
  0x62   :  { %1368 = vmatprep.subr.bf16.mxu1 %v1740_v1  ;;  %v116_v22 = vld [vmem:[%s115_s29] sm:$0x1]  ;;  %113 = vst [vmem:[#allocation2 + $0x4] sm:$0x1] %v112_v21  ;;  %s139_s15 = scalar_lea.vmem [#allocation8], %s1899_s2  ;;  %s1164_s3 = sld [smem:[#allocation4 + $0xc]] }
  0x63   :  { %117 = vst [vmem:[#allocation2 + $0x5] sm:$0x1] %v116_v22  ;;  %v120_v23 = vld [vmem:[%s119_s30] sm:$0x1]  ;;  %s1165_s16 = sld [smem:[#allocation4 + $0xd]]  ;;  %s1166_s5 = sld [smem:[#allocation4 + $0xe]] }
  0x64   :  { %1345 = vmatpush3.bf16.msra.mxu0 %v1565_v7  ;;  %v124_v24 = vld [vmem:[%s123_s8] sm:$0x1]  ;;  %121 = vst [vmem:[#allocation2 + $0x6] sm:$0x1] %v120_v23  ;;  %s1167_s11 = sld [smem:[#allocation4 + $0xf]]  ;;  %s1916_s12 = sld [smem:[#allocation4 + $0x10]] }
  0x65   :  { %1369 = vmatpush3.bf16.msra.mxu1 %v1870_v8  ;;  %1346 = vmatprep.subr.bf16.mxu0 %v1567_v9  ;;  %125 = vst [vmem:[#allocation2 + $0x7] sm:$0x1] %v124_v24  ;;  %v128_v25 = vld [vmem:[%s127_s9] sm:$0x1]  ;;  %s1919_s17 = sld [smem:[#allocation4 + $0x11]]  ;;  %s1921_s18 = sld [smem:[#allocation4 + $0x12]] }
  0x66   :  { %1370 = vmatprep.subr.bf16.mxu1 %v1740_v1  ;;  %v132_v26 = vld [vmem:[%s131_s10] sm:$0x1]  ;;  %129 = vst [vmem:[#allocation2 + $0x8] sm:$0x1] %v128_v25  ;;  %s1923_s19 = sld [smem:[#allocation4 + $0x13]]  ;;  %s1925_s20 = sld [smem:[#allocation4 + $0x14]] }
  0x67   :  { %133 = vst [vmem:[#allocation2 + $0x9] sm:$0x1] %v132_v26  ;;  %v136_v27 = vld [vmem:[%s135_s14] sm:$0x1]  ;;  %s1929_s21 = sld [smem:[#allocation4 + $0x15]]  ;;  %s1931_s22 = sld [smem:[#allocation4 + $0x16]] }
  0x68   :  { %1347 = vmatpush3.bf16.msra.mxu0 %v1567_v9  ;;  %v140_v28 = vld [vmem:[%s139_s15] sm:$0x1]  ;;  %137 = vst [vmem:[#allocation2 + $0xa] sm:$0x1] %v136_v27  ;;  %s1933_s23 = sld [smem:[#allocation4 + $0x17]]  ;;  %s143_s24 = scalar_lea.vmem [#allocation8], %s1164_s3 }
  0x69   :  { %1371 = vmatpush3.bf16.msra.mxu1 %v1873_v10  ;;  %1348 = vmatprep.subr.bf16.mxu0 %v1569_v11  ;;  %141 = vst [vmem:[#allocation2 + $0xb] sm:$0x1] %v140_v28  ;;  %v144_v30 = vld [vmem:[%s143_s24] sm:$0x1]  ;;  %s147_s2 = scalar_lea.vmem [#allocation8], %s1165_s16  ;;  %s151_s26 = scalar_lea.vmem [#allocation8], %s1166_s5 }
  0x6a   :  { %1372 = vmatprep.subr.bf16.mxu1 %v1740_v1  ;;  %145 = vst [vmem:[#allocation2 + $0xc] sm:$0x1] %v144_v30  ;;  %v148_v31 = vld [vmem:[%s147_s2] sm:$0x1]  ;;  %s155_s1 = scalar_lea.vmem [#allocation8], %s1167_s11  ;;  %s159_s25 = scalar_lea.vmem [#allocation8], %s1916_s12 }
  0x6b   :  { %v152_v32 = vld [vmem:[%s151_s26] sm:$0x1]  ;;  %149 = vst [vmem:[#allocation2 + $0xd] sm:$0x1] %v148_v31  ;;  %s163_s27 = scalar_lea.vmem [#allocation8], %s1919_s17  ;;  %s167_s28 = scalar_lea.vmem [#allocation8], %s1921_s18 }
  0x6c   :  { %1349 = vmatpush3.bf16.msra.mxu0 %v1569_v11  ;;  %153 = vst [vmem:[#allocation2 + $0xe] sm:$0x1] %v152_v32  ;;  %v156_v33 = vld [vmem:[%s155_s1] sm:$0x1]  ;;  %s171_s29 = scalar_lea.vmem [#allocation8], %s1923_s19  ;;  %s175_s30 = scalar_lea.vmem [#allocation8], %s1925_s20 }
  0x6d   :  { %1373 = vmatpush3.bf16.msra.mxu1 %v1877_v12  ;;  %1350 = vmatprep.subr.bf16.mxu0 %v1571_v13  ;;  %v160_v34 = vld [vmem:[%s159_s25] sm:$0x1]  ;;  %157 = vst [vmem:[#allocation2 + $0xf] sm:$0x1] %v156_v33  ;;  %s179_s8 = scalar_lea.vmem [#allocation8], %s1929_s21  ;;  %s183_s9 = scalar_lea.vmem [#allocation8], %s1931_s22 }
  0x6e   :  { %1374 = vmatprep.subr.bf16.mxu1 %v1740_v1  ;;  %161 = vst [vmem:[#allocation2 + $0x10] sm:$0x1] %v160_v34  ;;  %v164_v35 = vld [vmem:[%s163_s27] sm:$0x1]  ;;  %s187_s10 = scalar_lea.vmem [#allocation8], %s1933_s23  ;;  %s1176_s14 = sld [smem:[#allocation4 + $0x18]] }
  0x6f   :  { %v168_v36 = vld [vmem:[%s167_s28] sm:$0x1]  ;;  %165 = vst [vmem:[#allocation2 + $0x11] sm:$0x1] %v164_v35  ;;  %s1177_s15 = sld [smem:[#allocation4 + $0x19]]  ;;  %s1178_s3 = sld [smem:[#allocation4 + $0x1a]] }
  0x70   :  { %1351 = vmatpush3.bf16.msra.mxu0 %v1571_v13  ;;  %169 = vst [vmem:[#allocation2 + $0x12] sm:$0x1] %v168_v36  ;;  %v172_v37 = vld [vmem:[%s171_s29] sm:$0x1]  ;;  %s1179_s16 = sld [smem:[#allocation4 + $0x1b]]  ;;  %s1180_s5 = sld [smem:[#allocation4 + $0x1c]] }
  0x71   :  { %1375 = vmatpush3.bf16.msra.mxu1 %v1895_v14  ;;  %1352 = vmatprep.subr.bf16.mxu0 %v1573_v15  ;;  %v176_v38 = vld [vmem:[%s175_s30] sm:$0x1]  ;;  %173 = vst [vmem:[#allocation2 + $0x13] sm:$0x1] %v172_v37  ;;  %s1181_s11 = sld [smem:[#allocation4 + $0x1d]]  ;;  %s1182_s12 = sld [smem:[#allocation4 + $0x1e]] }
  0x72   :  { %1376 = vmatprep.subr.bf16.mxu1 %v1740_v1  ;;  %177 = vst [vmem:[#allocation2 + $0x14] sm:$0x1] %v176_v38  ;;  %v180_v39 = vld [vmem:[%s179_s8] sm:$0x1]  ;;  %s1183_s17 = sld [smem:[#allocation4 + $0x1f]]  ;;  %s1184_s26 = sld [smem:[#allocation4 + $0x20]] }
  0x73   :  { %v184_v40 = vld [vmem:[%s183_s9] sm:$0x1]  ;;  %181 = vst [vmem:[#allocation2 + $0x15] sm:$0x1] %v180_v39  ;;  %s1185_s1 = sld [smem:[#allocation4 + $0x21]]  ;;  %s1186_s25 = sld [smem:[#allocation4 + $0x22]] }
  0x74   :  { %1353 = vmatpush3.bf16.msra.mxu0 %v1573_v15  ;;  %185 = vst [vmem:[#allocation2 + $0x16] sm:$0x1] %v184_v40  ;;  %v188_v41 = vld [vmem:[%s187_s10] sm:$0x1]  ;;  %v351_v43 = vld [vmem:[#allocation2 + $0x8] sm:$0xff]  ;;  %s191_s18 = scalar_lea.vmem [#allocation8], %s1176_s14 }
  0x75   :  { %1377 = vmatpush3.bf16.msra.mxu1 %v1904_v20  ;;  %1382 = vmatprep.subr.bf16.mxu0 %v1740_v1  ;;  %189 = vst [vmem:[#allocation2 + $0x17] sm:$0x1] %v188_v41  ;;  %v350_v42 = vld [vmem:[#allocation2] sm:$0xff]  ;;  %s195_s19 = scalar_lea.vmem [#allocation8], %s1177_s15  ;;  %s199_s20 = scalar_lea.vmem [#allocation8], %s1178_s3 }
  0x76   :  { %1402 = vmatprep.subr.bf16.mxu1 %v1740_v1  ;;  %v358_v44 = vpack.c.bf16 %v351_v43, %v350_v42  ;;  %v192_v45 = vld [vmem:[%s191_s18] sm:$0x1]  ;;  %s203_s21 = scalar_lea.vmem [#allocation8], %s1179_s16  ;;  %s207_s22 = scalar_lea.vmem [#allocation8], %s1180_s5 }
  0x77   :  { %v196_v46 = vld [vmem:[%s195_s19] sm:$0x1]  ;;  %193 = vst [vmem:[#allocation2 + $0x18] sm:$0x1] %v192_v45  ;;  %s211_s23 = scalar_lea.vmem [#allocation8], %s1181_s11  ;;  %s215_s24 = scalar_lea.vmem [#allocation8], %s1182_s12 }
  0x78   :  { %1379 = vmatmul.mubr.bf16.vlgmr.msra.gmra.mrb[0].mxu1 %v1742_v29  ;;  %1354 = vmatprep.mubr.bf16.mxu0 %v358_v44  ;;  %197 = vst [vmem:[#allocation2 + $0x19] sm:$0x1] %v196_v46  ;;  %v200_v47 = vld [vmem:[%s199_s20] sm:$0x1]  ;;  %s219_s2 = scalar_lea.vmem [#allocation8], %s1183_s17  ;;  %s1187_s27 = sld [smem:[#allocation4 + $0x23]] }
  0x79   :  { %1403 = vmatpush3.bf16.msra.mxu1 %v1857_v2  ;;  %1418 = vmatprep.mubr.msk.bf16.mxu1 %vm1741_vm0, %v1740_v1  ;;  %v204_v48 = vld [vmem:[%s203_s21] sm:$0x1]  ;;  %201 = vst [vmem:[#allocation2 + $0x1a] sm:$0x1] %v200_v47  ;;  %s1188_s28 = sld [smem:[#allocation4 + $0x24]]  ;;  %s1189_s29 = sld [smem:[#allocation4 + $0x25]] }
  0x7a   :  { %1404 = vmatprep.subr.bf16.mxu1 %v1740_v1  ;;  %205 = vst [vmem:[#allocation2 + $0x1b] sm:$0x1] %v204_v48  ;;  %v208_v49 = vld [vmem:[%s207_s22] sm:$0x1]  ;;  %s1190_s30 = sld [smem:[#allocation4 + $0x26]]  ;;  %s1191_s8 = sld [smem:[#allocation4 + $0x27]] }
  0x7b   :  { %v212_v50 = vld [vmem:[%s211_s23] sm:$0x1]  ;;  %209 = vst [vmem:[#allocation2 + $0x1c] sm:$0x1] %v208_v49  ;;  %s1977_s9 = sld [smem:[#allocation4 + $0x28]]  ;;  %s1979_s10 = sld [smem:[#allocation4 + $0x29]] }
  0x7c   :  { %213 = vst [vmem:[#allocation2 + $0x1d] sm:$0x1] %v212_v50  ;;  %v216_v51 = vld [vmem:[%s215_s24] sm:$0x1]  ;;  %v352_v53 = vld [vmem:[#allocation2 + $0x10] sm:$0xff]  ;;  %s1981_s14 = sld [smem:[#allocation4 + $0x2a]] }
  0x7d   :  { %1405 = vmatpush3.bf16.msra.mxu1 %v1862_v4  ;;  %v220_v52 = vld [vmem:[%s219_s2] sm:$0x1]  ;;  %217 = vst [vmem:[#allocation2 + $0x1e] sm:$0x1] %v216_v51  ;;  %s1983_s15 = sld [smem:[#allocation4 + $0x2b]]  ;;  %s223_s3 = scalar_lea.vmem [#allocation8], %s1184_s26 }
  0x7e   :  { %1406 = vmatprep.subr.bf16.mxu1 %v1740_v1  ;;  %221 = vst [vmem:[#allocation2 + $0x1f] sm:$0x1] %v220_v52  ;;  %v224_v56 = vld [vmem:[%s223_s3] sm:$0x1]  ;;  %s227_s16 = scalar_lea.vmem [#allocation8], %s1185_s1  ;;  %s231_s5 = scalar_lea.vmem [#allocation8], %s1186_s25 }
  0x7f   :  { %v228_v57 = vld [vmem:[%s227_s16] sm:$0x1]  ;;  %225 = vst [vmem:[#allocation2 + $0x20] sm:$0x1] %v224_v56  ;;  %s235_s11 = scalar_lea.vmem [#allocation8], %s1187_s27  ;;  %s239_s12 = scalar_lea.vmem [#allocation8], %s1188_s28 }
  0x80   :  { %229 = vst [vmem:[#allocation2 + $0x21] sm:$0x1] %v228_v57  ;;  %v232_v58 = vld [vmem:[%s231_s5] sm:$0x1]  ;;  %s243_s17 = scalar_lea.vmem [#allocation8], %s1189_s29  ;;  %s247_s18 = scalar_lea.vmem [#allocation8], %s1190_s30 }
  0x81   :  { %1407 = vmatpush3.bf16.msra.mxu1 %v1866_v6  ;;  %v236_v59 = vld [vmem:[%s235_s11] sm:$0x1]  ;;  %233 = vst [vmem:[#allocation2 + $0x22] sm:$0x1] %v232_v58  ;;  %s251_s19 = scalar_lea.vmem [#allocation8], %s1191_s8  ;;  %s255_s20 = scalar_lea.vmem [#allocation8], %s1977_s9 }
  0x82   :  { %1408 = vmatprep.subr.bf16.mxu1 %v1740_v1  ;;  %237 = vst [vmem:[#allocation2 + $0x23] sm:$0x1] %v236_v59  ;;  %v240_v60 = vld [vmem:[%s239_s12] sm:$0x1]  ;;  %s259_s21 = scalar_lea.vmem [#allocation8], %s1979_s10  ;;  %s263_s22 = scalar_lea.vmem [#allocation8], %s1981_s14 }
  0x83   :  { %v244_v61 = vld [vmem:[%s243_s17] sm:$0x1]  ;;  %241 = vst [vmem:[#allocation2 + $0x24] sm:$0x1] %v240_v60  ;;  %s267_s23 = scalar_lea.vmem [#allocation8], %s1983_s15  ;;  %s1196_s24 = sld [smem:[#allocation4 + $0x2c]] }
  0x84   :  { %245 = vst [vmem:[#allocation2 + $0x25] sm:$0x1] %v244_v61  ;;  %v248_v62 = vld [vmem:[%s247_s18] sm:$0x1]  ;;  %s1197_s2 = sld [smem:[#allocation4 + $0x2d]]  ;;  %s1198_s26 = sld [smem:[#allocation4 + $0x2e]] }
  0x85   :  { %1409 = vmatpush3.bf16.msra.mxu1 %v1870_v8  ;;  %v353_v54 = vld [vmem:[#allocation2 + $0x18] sm:$0xff]  ;;  %v252_v63 = vld [vmem:[%s251_s19] sm:$0x1]  ;;  %249 = vst [vmem:[#allocation2 + $0x26] sm:$0x1] %v248_v62  ;;  %s1199_s1 = sld [smem:[#allocation4 + $0x2f]] }
  0x86   :  { %1410 = vmatprep.subr.bf16.mxu1 %v1740_v1  ;;  %v359_v55 = vpack.c.bf16 %v353_v54, %v352_v53  ;;  %253 = vst [vmem:[#allocation2 + $0x27] sm:$0x1] %v252_v63  ;;  %v256_v0 = vld [vmem:[%s255_s20] sm:$0x1]  ;;  %s1200_s25 = sld [smem:[#allocation4 + $0x30]]  ;;  %s1201_s27 = sld [smem:[#allocation4 + $0x31]] }
  0x87   :  { %v260_v3 = vld [vmem:[%s259_s21] sm:$0x1]  ;;  %257 = vst [vmem:[#allocation2 + $0x28] sm:$0x1] %v256_v0  ;;  %s1202_s28 = sld [smem:[#allocation4 + $0x32]]  ;;  %s1203_s29 = sld [smem:[#allocation4 + $0x33]] }
  0x88   :  { %1355 = vmatmul.mubr.bf16.vlgmr.msra.gmra.mrb[0].mxu0 %v359_v55  ;;  %261 = vst [vmem:[#allocation2 + $0x29] sm:$0x1] %v260_v3  ;;  %v264_v5 = vld [vmem:[%s263_s22] sm:$0x1]  ;;  %s1204_s30 = sld [smem:[#allocation4 + $0x34]]  ;;  %s1989_s8 = sld [smem:[#allocation4 + $0x35]] }
  0x89   :  { %1411 = vmatpush3.bf16.msra.mxu1 %v1873_v10  ;;  %1383 = vmatpush3.bf16.msra.mxu0 %v1857_v2  ;;  %v268_v7 = vld [vmem:[%s267_s23] sm:$0x1]  ;;  %265 = vst [vmem:[#allocation2 + $0x2a] sm:$0x1] %v264_v5  ;;  %s1991_s9 = sld [smem:[#allocation4 + $0x36]]  ;;  %s1993_s10 = sld [smem:[#allocation4 + $0x37]] }
  0x8a   :  { %1412 = vmatprep.subr.bf16.mxu1 %v1740_v1  ;;  %1384 = vmatprep.subr.bf16.mxu0 %v1740_v1  ;;  %269 = vst [vmem:[#allocation2 + $0x2b] sm:$0x1] %v268_v7  ;;  %s271_s14 = scalar_lea.vmem [#allocation8], %s1196_s24  ;;  %s275_s15 = scalar_lea.vmem [#allocation8], %s1197_s2  ;;  %v2003_v43 = vld [vmem:[%s2156_s4] ss:$0 sm:$0xff] }
  0x8b   :  { %v272_v9 = vld [vmem:[%s271_s14] sm:$0x1]  ;;  %s279_s3 = scalar_lea.vmem [#allocation8], %s1198_s26  ;;  %s283_s16 = scalar_lea.vmem [#allocation8], %s1199_s1 }
  0x8c   :  { %273 = vst [vmem:[#allocation2 + $0x2c] sm:$0x1] %v272_v9  ;;  %v276_v11 = vld [vmem:[%s275_s15] sm:$0x1]  ;;  %s287_s5 = scalar_lea.vmem [#allocation8], %s1200_s25  ;;  %s291_s11 = scalar_lea.vmem [#allocation8], %s1201_s27 }
  0x8d   :  { %1413 = vmatpush3.bf16.msra.mxu1 %v1877_v12  ;;  %1385 = vmatpush3.bf16.msra.mxu0 %v1862_v4  ;;  %v280_v13 = vld [vmem:[%s279_s3] sm:$0x1]  ;;  %277 = vst [vmem:[#allocation2 + $0x2d] sm:$0x1] %v276_v11  ;;  %s295_s12 = scalar_lea.vmem [#allocation8], %s1202_s28  ;;  %s299_s17 = scalar_lea.vmem [#allocation8], %s1203_s29 }
  0x8e   :  { %1414 = vmatprep.subr.bf16.mxu1 %v1740_v1  ;;  %1386 = vmatprep.subr.bf16.mxu0 %v1740_v1  ;;  %281 = vst [vmem:[#allocation2 + $0x2e] sm:$0x1] %v280_v13  ;;  %v284_v15 = vld [vmem:[%s283_s16] sm:$0x1]  ;;  %s303_s18 = scalar_lea.vmem [#allocation8], %s1204_s30  ;;  %s307_s19 = scalar_lea.vmem [#allocation8], %s1989_s8 }
  0x8f   :  { %v288_v16 = vld [vmem:[%s287_s5] sm:$0x1]  ;;  %285 = vst [vmem:[#allocation2 + $0x2f] sm:$0x1] %v284_v15  ;;  %s311_s20 = scalar_lea.vmem [#allocation8], %s1991_s9  ;;  %s315_s21 = scalar_lea.vmem [#allocation8], %s1993_s10 }
  0x90   :  { %289 = vst [vmem:[#allocation2 + $0x30] sm:$0x1] %v288_v16  ;;  %v292_v17 = vld [vmem:[%s291_s11] sm:$0x1]  ;;  %s1208_s22 = sld [smem:[#allocation4 + $0x38]]  ;;  %s1209_s23 = sld [smem:[#allocation4 + $0x39]] }
  0x91   :  { %1415 = vmatpush3.bf16.msra.mxu1 %v1895_v14  ;;  %1387 = vmatpush3.bf16.msra.mxu0 %v1866_v6  ;;  %v296_v18 = vld [vmem:[%s295_s12] sm:$0x1]  ;;  %293 = vst [vmem:[#allocation2 + $0x31] sm:$0x1] %v292_v17  ;;  %s1210_s24 = sld [smem:[#allocation4 + $0x3a]]  ;;  %s1211_s2 = sld [smem:[#allocation4 + $0x3b]] }
  0x92   :  { %1416 = vmatprep.subr.bf16.mxu1 %v1740_v1  ;;  %1388 = vmatprep.subr.bf16.mxu0 %v1740_v1  ;;  %297 = vst [vmem:[#allocation2 + $0x32] sm:$0x1] %v296_v18  ;;  %v300_v19 = vld [vmem:[%s299_s17] sm:$0x1]  ;;  %s1212_s26 = sld [smem:[#allocation4 + $0x3c]]  ;;  %s1213_s1 = sld [smem:[#allocation4 + $0x3d]] }
  0x93   :  { %v304_v21 = vld [vmem:[%s303_s18] sm:$0x1]  ;;  %301 = vst [vmem:[#allocation2 + $0x33] sm:$0x1] %v300_v19  ;;  %s1214_s25 = sld [smem:[#allocation4 + $0x3e]]  ;;  %s1215_s27 = sld [smem:[#allocation4 + $0x3f]] }
  0x94   :  { %305 = vst [vmem:[#allocation2 + $0x34] sm:$0x1] %v304_v21  ;;  %v308_v22 = vld [vmem:[%s307_s19] sm:$0x1] }
  0x95   :  { %1417 = vmatpush3.bf16.msra.mxu1 %v1904_v20  ;;  %1389 = vmatpush3.bf16.msra.mxu0 %v1870_v8  ;;  %v312_v23 = vld [vmem:[%s311_s20] sm:$0x1]  ;;  %309 = vst [vmem:[#allocation2 + $0x35] sm:$0x1] %v308_v22 }
  0x96   :  { %1442 = vmatprep.subr.bf16.mxu1 %v1740_v1  ;;  %1390 = vmatprep.subr.bf16.mxu0 %v1740_v1  ;;  %313 = vst [vmem:[#allocation2 + $0x36] sm:$0x1] %v312_v23  ;;  %v316_v24 = vld [vmem:[%s315_s21] sm:$0x1]  ;;  %v355_v26 = vld [vmem:[#allocation2 + $0x28] sm:$0xff]  ;;  %s319_s28 = scalar_lea.vmem [#allocation8], %s1208_s22 }
  0x97   :  { %317 = vst [vmem:[#allocation2 + $0x37] sm:$0x1] %v316_v24  ;;  %v354_v25 = vld [vmem:[#allocation2 + $0x20] sm:$0xff]  ;;  %s323_s29 = scalar_lea.vmem [#allocation8], %s1209_s23  ;;  %s327_s30 = scalar_lea.vmem [#allocation8], %s1210_s24 }
  0x98   :  { %v360_v27 = vpack.c.bf16 %v355_v26, %v354_v25  ;;  %v320_v28 = vld [vmem:[%s319_s28] sm:$0x1]  ;;  %s331_s8 = scalar_lea.vmem [#allocation8], %s1211_s2  ;;  %s335_s9 = scalar_lea.vmem [#allocation8], %s1212_s26 }
  0x99   :  { %1391 = vmatpush3.bf16.msra.mxu0 %v1873_v10  ;;  %v324_v29 = vld [vmem:[%s323_s29] sm:$0x1]  ;;  %321 = vst [vmem:[#allocation2 + $0x38] sm:$0x1] %v320_v28  ;;  %s339_s10 = scalar_lea.vmem [#allocation8], %s1213_s1  ;;  %s343_s14 = scalar_lea.vmem [#allocation8], %s1214_s25 }
  0x9a   :  { %1392 = vmatprep.subr.bf16.mxu0 %v1740_v1  ;;  %1358 = vmatprep.mubr.bf16.mxu0 %v360_v27  ;;  %325 = vst [vmem:[#allocation2 + $0x39] sm:$0x1] %v324_v29  ;;  %v328_v30 = vld [vmem:[%s327_s30] sm:$0x1]  ;;  %s347_s15 = scalar_lea.vmem [#allocation8], %s1215_s27 }
  0x9b   :  { %v332_v31 = vld [vmem:[%s331_s8] sm:$0x1]  ;;  %329 = vst [vmem:[#allocation2 + $0x3a] sm:$0x1] %v328_v30 }
  0x9c   :  { %333 = vst [vmem:[#allocation2 + $0x3b] sm:$0x1] %v332_v31  ;;  %v336_v32 = vld [vmem:[%s335_s9] sm:$0x1] }
  0x9d   :  { %1393 = vmatpush3.bf16.msra.mxu0 %v1877_v12  ;;  %v340_v33 = vld [vmem:[%s339_s10] sm:$0x1]  ;;  %337 = vst [vmem:[#allocation2 + $0x3c] sm:$0x1] %v336_v32  ;;  %v1600_v32 = vld [vmem:[#allocation11 + $0x8] sm:$0xff]  }
  0x9e   :  { %1394 = vmatprep.subr.bf16.mxu0 %v1740_v1  ;;  %341 = vst [vmem:[#allocation2 + $0x3d] sm:$0x1] %v340_v33  ;;  %v344_v34 = vld [vmem:[%s343_s14] sm:$0x1]  ;;  %v356_v36 = vld [vmem:[#allocation2 + $0x30] sm:$0xff] }
  0x9f   :  { %v348_v35 = vld [vmem:[%s347_s15] sm:$0x1]  ;;  %345 = vst [vmem:[#allocation2 + $0x3e] sm:$0x1] %v344_v34 }
  0xa0   :  { %349 = vst [vmem:[#allocation2 + $0x3f] sm:$0x1] %v348_v35  ;;  %v1599_v31 = vld [vmem:[#allocation11] sm:$0xff]  }
  0xa1   :  { %1395 = vmatpush3.bf16.msra.mxu0 %v1895_v14 }
  0xa2   :  { %1396 = vmatprep.subr.bf16.mxu0 %v1740_v1 }
  0xa5   :  { %1397 = vmatpush3.bf16.msra.mxu0 %v1904_v20 }
  0xa6   :  { %1422 = vmatprep.subr.bf16.mxu0 %v1740_v1 }
  0xa7   :  { %v357_v37 = vld [vmem:[#allocation2 + $0x38] sm:$0xff] }
  0xa8   :  { %v361_v38 = vpack.c.bf16 %v357_v37, %v356_v36 }
  0xaa   :  { %1359 = vmatmul.mubr.bf16.gmra.mrb[4].mxu0 %v361_v38  ;;  %v1576_v38 = vld [vmem:[#allocation12 + $0x8] sm:$0xff]  }
  0xab   :  { %1398 = vmatprep.mubr.msk.bf16.mxu0 %vm1741_vm0, %v1740_v1 }
 0x14b   :  { %v596_v39 = vpop.f32.mrb[0].mxu1 }
 0x14c   :  { %v1380_v40 = vpop.f32.mrb[1].mxu1 }
 0x14d   :  { %v599_v41 = vpop.f32.mrb[2].mxu1  ;;  %v1580_v40 = vld [vmem:[#allocation12 + $0x28] sm:$0xff]  }
 0x14e   :  { %v1381_v42 = vpop.f32.mrb[3].mxu1  ;;  %v1581_v41 = vld [vmem:[#allocation12 + $0x30] sm:$0xff]  }
 0x14f   :  { %v1582_v42 = vld [vmem:[#allocation12 + $0x38] sm:$0xff]  }
 0x15b   :  { %v1356_v44 = vpop.f32.mrb[0].mxu0 }
 0x15c   :  { %v467_v45 = vpop.f32.mrb[1].mxu0  ;;  %v476_v0 = vadd.f32 %v1356_v44, %v2003_v43 }
 0x15d   :  { %v468_v46 = vadd.f32 %v2003_v43, %v467_v45  ;;  %v2006_v47 = vpop.f32.mrb[2].mxu0 }
 0x15e   :  { %v470_v48 = vpop.f32.mrb[3].mxu0  ;;  %v479_v16 = vadd.f32 %v2006_v47, %v2003_v43 }
 0x15f   :  { %v602_v49 = vadd.f32 %v596_v39, %v468_v46  ;;  %v471_v56 = vadd.f32 %v2003_v43, %v470_v48  ;;  %v1579_v39 = vld [vmem:[#allocation12 + $0x20] sm:$0xff]  }
 0x161   :  { %1583 = vtanh.f32 %v602_v49 }
 0x16b   :  { %v2008_v50 = vpop.eup %1583 }
 0x16c   :  { %v605_v51 = vpack.c.bf16 %v2008_v50, %v2008_v50 }
 0x16e   :  { %1399 = vmatmul.mubr.bf16.vlgmr.msra.gmra.mrb[8].mxu0 %v605_v51 }
 0x16f   :  { %1423 = vmatpush3.bf16.msra.mxu0 %v1857_v2  ;;  %1438 = vmatprep.mubr.msk.bf16.mxu0 %vm1741_vm0, %v1740_v1 }
 0x170   :  { %1424 = vmatprep.subr.bf16.mxu0 %v1740_v1 }
 0x173   :  { %1425 = vmatpush3.bf16.msra.mxu0 %v1862_v4 }
 0x174   :  { %1426 = vmatprep.subr.bf16.mxu0 %v1740_v1 }
 0x177   :  { %1427 = vmatpush3.bf16.msra.mxu0 %v1866_v6 }
 0x178   :  { %1428 = vmatprep.subr.bf16.mxu0 %v1740_v1 }
 0x17b   :  { %1429 = vmatpush3.bf16.msra.mxu0 %v1870_v8 }
 0x17c   :  { %1430 = vmatprep.subr.bf16.mxu0 %v1740_v1 }
 0x17d   :  { %v2030_v52 = vpop.f32.mrb[4].mxu0 }
 0x17e   :  { %v2032_v53 = vpop.f32.mrb[5].mxu0  ;;  %v492_v46 = vadd.f32 %v2030_v52, %v2003_v43 }
 0x17f   :  { %1431 = vmatpush3.bf16.msra.mxu0 %v1873_v10  ;;  %v2034_v54 = vpop.f32.mrb[6].mxu0 }
 0x180   :  { %1432 = vmatprep.subr.bf16.mxu0 %v1740_v1  ;;  %v2036_v55 = vpop.f32.mrb[7].mxu0 }
 0x183   :  { %1433 = vmatpush3.bf16.msra.mxu0 %v1877_v12 }
 0x184   :  { %1434 = vmatprep.subr.bf16.mxu0 %v1740_v1 }
 0x187   :  { %1435 = vmatpush3.bf16.msra.mxu0 %v1895_v14 }
 0x188   :  { %1436 = vmatprep.subr.bf16.mxu0 %v1740_v1 }
 0x18b   :  { %1437 = vmatpush3.bf16.msra.mxu0 %v1904_v20 }
 0x18c   :  { %1462 = vmatprep.subr.bf16.mxu0 %v1740_v1 }
 0x241   :  { %v640_v57 = vpop.f32.mrb[8].mxu0 }
 0x242   :  { %v646_v58 = vadd.f32 %v640_v57, %v471_v56  ;;  %v1400_v59 = vpop.f32.mrb[9].mxu0  ;;  %v1233_v56 = vld [vmem:[%s2158_s6] ss:$0 sm:$0xff]  ;;  %s1743_s6 = smov [#allocation14]  }
 0x243   :  { %v643_v60 = vpop.f32.mrb[10].mxu0  ;;  %s1074_s11 = sshll.u32 %s1743_s6, 4  ;;  %s1075_s11 = int_to_ptr.vmem [resolvable:$true] %s1074_s11 }
 0x244   :  { %1585 = vtanh.f32 %v646_v58  ;;  %v1401_v61 = vpop.f32.mrb[11].mxu0  ;;  %s1699_s12 = scalar_lea.vmem %s1075_s11, 1024  ;;  %p1704_p8 = scmp.lt.s32.totalorder %s1075_s11, %s1075_s11 }
 0x245   :  { %p1700_p7 = scmp.ne.s32.totalorder %s1075_s11, %s1699_s12  ;;  %p1705_p9 = scmp.lt.s32.totalorder %s1699_s12, %s1699_s12 }
 0x247   :  { %p1706_p10 = por %p1705_p9, %p1704_p8 }
 0x249   :  { %p1707_p11 = pnand %p1706_p10, %p1700_p7 }
 0x24e   :  { %v2039_v62 = vpop.eup %1585 }
 0x24f   :  { %v649_v63 = vpack.c.bf16 %v2039_v62, %v2039_v62 }
 0x251   :  { %1419 = vmatmul.mubr.bf16.vlgmr.msra.gmra.mrb[4].mxu1 %v649_v63 }
 0x252   :  { %1443 = vmatpush3.bf16.msra.mxu1 %v1857_v2  ;;  %1458 = vmatprep.mubr.msk.bf16.mxu1 %vm1741_vm0, %v1740_v1 }
 0x253   :  { %1444 = vmatprep.subr.bf16.mxu1 %v1740_v1 }
 0x256   :  { %1445 = vmatpush3.bf16.msra.mxu1 %v1862_v4 }
 0x257   :  { %1446 = vmatprep.subr.bf16.mxu1 %v1740_v1 }
 0x25a   :  { %1447 = vmatpush3.bf16.msra.mxu1 %v1866_v6 }
 0x25b   :  { %1448 = vmatprep.subr.bf16.mxu1 %v1740_v1 }
 0x25e   :  { %1449 = vmatpush3.bf16.msra.mxu1 %v1870_v8 }
 0x25f   :  { %1450 = vmatprep.subr.bf16.mxu1 %v1740_v1 }
 0x262   :  { %1451 = vmatpush3.bf16.msra.mxu1 %v1873_v10 }
 0x263   :  { %1452 = vmatprep.subr.bf16.mxu1 %v1740_v1 }
 0x266   :  { %1453 = vmatpush3.bf16.msra.mxu1 %v1877_v12 }
 0x267   :  { %1454 = vmatprep.subr.bf16.mxu1 %v1740_v1 }
 0x26a   :  { %1455 = vmatpush3.bf16.msra.mxu1 %v1895_v14 }
 0x26b   :  { %1456 = vmatprep.subr.bf16.mxu1 %v1740_v1 }
 0x26e   :  { %1457 = vmatpush3.bf16.msra.mxu1 %v1904_v20 }
 0x26f   :  { %1482 = vmatprep.subr.bf16.mxu1 %v1740_v1 }
 0x324   :  { %v684_v3 = vpop.f32.mrb[4].mxu1 }
 0x325   :  { %v690_v5 = vadd.f32 %v684_v3, %v476_v0  ;;  %v1420_v7 = vpop.f32.mrb[5].mxu1  ;;  %v495_v0 = vadd.f32 %v2034_v54, %v2003_v43 }
 0x326   :  { %v687_v9 = vpop.f32.mrb[6].mxu1 }
 0x327   :  { %1587 = vtanh.f32 %v690_v5  ;;  %v1421_v11 = vpop.f32.mrb[7].mxu1 }
 0x331   :  { %v2062_v13 = vpop.eup %1587 }
 0x332   :  { %v693_v15 = vpack.c.bf16 %v2062_v13, %v2062_v13 }
 0x334   :  { %1439 = vmatmul.mubr.bf16.vlgmr.msra.gmra.mrb[12].mxu0 %v693_v15 }
 0x335   :  { %1463 = vmatpush3.bf16.msra.mxu0 %v1857_v2  ;;  %1478 = vmatprep.mubr.msk.bf16.mxu0 %vm1741_vm0, %v1740_v1 }
 0x336   :  { %1464 = vmatprep.subr.bf16.mxu0 %v1740_v1 }
 0x339   :  { %1465 = vmatpush3.bf16.msra.mxu0 %v1862_v4 }
 0x33a   :  { %1466 = vmatprep.subr.bf16.mxu0 %v1740_v1 }
 0x33d   :  { %1467 = vmatpush3.bf16.msra.mxu0 %v1866_v6 }
 0x33e   :  { %1468 = vmatprep.subr.bf16.mxu0 %v1740_v1 }
 0x341   :  { %1469 = vmatpush3.bf16.msra.mxu0 %v1870_v8 }
 0x342   :  { %1470 = vmatprep.subr.bf16.mxu0 %v1740_v1 }
 0x345   :  { %1471 = vmatpush3.bf16.msra.mxu0 %v1873_v10 }
 0x346   :  { %1472 = vmatprep.subr.bf16.mxu0 %v1740_v1 }
 0x349   :  { %1473 = vmatpush3.bf16.msra.mxu0 %v1877_v12 }
 0x34a   :  { %1474 = vmatprep.subr.bf16.mxu0 %v1740_v1 }
 0x34d   :  { %1475 = vmatpush3.bf16.msra.mxu0 %v1895_v14 }
 0x34e   :  { %1476 = vmatprep.subr.bf16.mxu0 %v1740_v1 }
 0x351   :  { %1477 = vmatpush3.bf16.msra.mxu0 %v1904_v20 }
 0x352   :  { %1502 = vmatprep.subr.bf16.mxu0 %v1740_v1 }
 0x407   :  { %v728_v17 = vpop.f32.mrb[12].mxu0 }
 0x408   :  { %v734_v18 = vadd.f32 %v728_v17, %v479_v16  ;;  %v1440_v19 = vpop.f32.mrb[13].mxu0 }
 0x409   :  { %v731_v21 = vpop.f32.mrb[14].mxu0 }
 0x40a   :  { %1589 = vtanh.f32 %v734_v18  ;;  %v1441_v22 = vpop.f32.mrb[15].mxu0 }
 0x414   :  { %v2086_v23 = vpop.eup %1589 }
 0x415   :  { %v737_v24 = vpack.c.bf16 %v2086_v23, %v2086_v23  ;;  %v922_v44 = vpack.c.bf16 %v2086_v23, %v2062_v13 }
 0x417   :  { %1459 = vmatmul.mubr.bf16.vlgmr.msra.gmra.mrb[8].mxu1 %v737_v24 }
 0x418   :  { %1483 = vmatpush3.bf16.msra.mxu1 %v1857_v2  ;;  %1498 = vmatprep.mubr.msk.bf16.mxu1 %vm1741_vm0, %v1740_v1  ;;  %v484_v2 = vadd.f32 %v2003_v43, %v2032_v53 }
 0x419   :  { %1484 = vmatprep.subr.bf16.mxu1 %v1740_v1 }
 0x41c   :  { %1485 = vmatpush3.bf16.msra.mxu1 %v1862_v4 }
 0x41d   :  { %1486 = vmatprep.subr.bf16.mxu1 %v1740_v1 }
 0x420   :  { %1487 = vmatpush3.bf16.msra.mxu1 %v1866_v6 }
 0x421   :  { %1488 = vmatprep.subr.bf16.mxu1 %v1740_v1 }
 0x424   :  { %1489 = vmatpush3.bf16.msra.mxu1 %v1870_v8 }
 0x425   :  { %1490 = vmatprep.subr.bf16.mxu1 %v1740_v1 }
 0x428   :  { %1491 = vmatpush3.bf16.msra.mxu1 %v1873_v10 }
 0x429   :  { %1492 = vmatprep.subr.bf16.mxu1 %v1740_v1 }
 0x42c   :  { %1493 = vmatpush3.bf16.msra.mxu1 %v1877_v12 }
 0x42d   :  { %1494 = vmatprep.subr.bf16.mxu1 %v1740_v1 }
 0x430   :  { %1495 = vmatpush3.bf16.msra.mxu1 %v1895_v14 }
 0x431   :  { %1496 = vmatprep.subr.bf16.mxu1 %v1740_v1 }
 0x434   :  { %1497 = vmatpush3.bf16.msra.mxu1 %v1904_v20 }
 0x4ea   :  { %v772_v4 = vpop.f32.mrb[8].mxu1 }
 0x4eb   :  { %v778_v25 = vadd.f32 %v772_v4, %v484_v2  ;;  %v1460_v26 = vpop.f32.mrb[9].mxu1 }
 0x4ec   :  { %v775_v27 = vpop.f32.mrb[10].mxu1 }
 0x4ed   :  { %1591 = vtanh.f32 %v778_v25  ;;  %v1461_v28 = vpop.f32.mrb[11].mxu1 }
 0x4f7   :  { %v1592_v29 = vpop.eup %1591 }
 0x4f8   :  { %v781_v30 = vpack.c.bf16 %v1592_v29, %v1592_v29 }
 0x4fa   :  { %1479 = vmatmul.mubr.bf16.vlgmr.msra.gmra.mrb[16].mxu0 %v781_v30 }
 0x4fb   :  { %1503 = vmatpush3.bf16.msra.mxu0 %v1599_v31  ;;  %1518 = vmatprep.mubr.msk.bf16.mxu0 %vm1741_vm0, %v1740_v1 }
 0x4fc   :  { %1504 = vmatprep.subr.bf16.mxu0 %v1740_v1 }
 0x4ff   :  { %1505 = vmatpush3.bf16.msra.mxu0 %v1600_v32 }
 0x500   :  { %1506 = vmatprep.subr.bf16.mxu0 %v1740_v1 }
 0x503   :  { %1507 = vmatpush3.bf16.msra.mxu0 %v1866_v6  ;;  %v1575_v6 = vld [vmem:[#allocation12] sm:$0xff]  }
 0x504   :  { %1508 = vmatprep.subr.bf16.mxu0 %v1740_v1  ;;  %1522 = vmatprep.subr.bf16.mxu1 %v1575_v6 }
 0x507   :  { %1509 = vmatpush3.bf16.msra.mxu0 %v1870_v8  ;;  %v487_v8 = vadd.f32 %v2003_v43, %v2036_v55 }
 0x508   :  { %1510 = vmatprep.subr.bf16.mxu0 %v1740_v1 }
 0x50b   :  { %1511 = vmatpush3.bf16.msra.mxu0 %v1873_v10 }
 0x50c   :  { %1512 = vmatprep.subr.bf16.mxu0 %v1740_v1 }
 0x50f   :  { %1513 = vmatpush3.bf16.msra.mxu0 %v1877_v12 }
 0x510   :  { %1514 = vmatprep.subr.bf16.mxu0 %v1740_v1 }
 0x513   :  { %1515 = vmatpush3.bf16.msra.mxu0 %v1895_v14  ;;  %v921_v14 = vpack.c.bf16 %v2039_v62, %v2008_v50 }
 0x514   :  { %1516 = vmatprep.subr.bf16.mxu0 %v1740_v1  ;;  %v1577_v1 = vld [vmem:[#allocation12 + $0x10] sm:$0xff]  }
 0x517   :  { %1517 = vmatpush3.bf16.msra.mxu0 %v1904_v20  ;;  %v1578_v20 = vld [vmem:[#allocation12 + $0x18] sm:$0xff]  }
 0x5cd   :  { %v816_v33 = vpop.f32.mrb[16].mxu0 }
 0x5ce   :  { %v822_v34 = vadd.f32 %v816_v33, %v487_v8  ;;  %v1480_v10 = vpop.f32.mrb[17].mxu0 }
 0x5cf   :  { %v819_v35 = vpop.f32.mrb[18].mxu0 }
 0x5d0   :  { %1593 = vtanh.f32 %v822_v34  ;;  %v1481_v36 = vpop.f32.mrb[19].mxu0 }
 0x5da   :  { %v1594_v12 = vpop.eup %1593 }
 0x5db   :  { %v825_v37 = vpack.c.bf16 %v1594_v12, %v1594_v12  ;;  %v923_v45 = vpack.c.bf16 %v1594_v12, %v1592_v29 }
 0x5dd   :  { %1499 = vmatmul.mubr.bf16.vlgmr.msra.gmra.mrb[12].mxu1 %v825_v37 }
 0x5de   :  { %1523 = vmatpush3.bf16.msra.mxu1 %v1575_v6  ;;  %1538 = vmatprep.mubr.bf16.mxu1 %v921_v14 }
 0x5df   :  { %1524 = vmatprep.subr.bf16.mxu1 %v1576_v38 }
 0x5e2   :  { %1525 = vmatpush3.bf16.msra.mxu1 %v1576_v38 }
 0x5e3   :  { %1526 = vmatprep.subr.bf16.mxu1 %v1577_v1 }
 0x5e6   :  { %1527 = vmatpush3.bf16.msra.mxu1 %v1577_v1 }
 0x5e7   :  { %1528 = vmatprep.subr.bf16.mxu1 %v1578_v20 }
 0x5ea   :  { %1529 = vmatpush3.bf16.msra.mxu1 %v1578_v20 }
 0x5eb   :  { %1530 = vmatprep.subr.bf16.mxu1 %v1579_v39 }
 0x5ee   :  { %1531 = vmatpush3.bf16.msra.mxu1 %v1579_v39 }
 0x5ef   :  { %1532 = vmatprep.subr.bf16.mxu1 %v1580_v40 }
 0x5f2   :  { %1533 = vmatpush3.bf16.msra.mxu1 %v1580_v40 }
 0x5f3   :  { %1534 = vmatprep.subr.bf16.mxu1 %v1581_v41 }
 0x5f6   :  { %1535 = vmatpush3.bf16.msra.mxu1 %v1581_v41 }
 0x5f7   :  { %1536 = vmatprep.subr.bf16.mxu1 %v1582_v42 }
 0x5fa   :  { %1537 = vmatpush3.bf16.msra.mxu1 %v1582_v42 }
 0x5fd   :  { %1539 = vmatmul.mubr.bf16.vlgmr.msra.gmra.mrb[16].mxu1 %v922_v44 }
 0x5fe   :  { %1542 = vmatprep.mubr.bf16.mxu1 %v923_v45 }
 0x6b0   :  { %v860_v47 = vpop.f32.mrb[12].mxu1 }
 0x6b1   :  { %v866_v48 = vadd.f32 %v860_v47, %v492_v46  ;;  %v1500_v49 = vpop.f32.mrb[13].mxu1 }
 0x6b2   :  { %v863_v50 = vpop.f32.mrb[14].mxu1 }
 0x6b3   :  { %1595 = vtanh.f32 %v866_v48  ;;  %v1501_v51 = vpop.f32.mrb[15].mxu1 }
 0x6bd   :  { %v1596_v53 = vpop.eup %1595 }
 0x6be   :  { %v869_v55 = vpack.c.bf16 %v1596_v53, %v1596_v53 }
 0x6c0   :  { %1519 = vmatmul.mubr.bf16.vlgmr.msra.gmra.mrb[20].mxu0 %v869_v55 }
 0x6d0   :  { %v1540_v57 = vpop.f32.mrb[16].mxu1 }
 0x6d1   :  { %v1039_v58 = vadd.f32 %v1540_v57, %v1233_v56  ;;  %v1030_v59 = vpop.f32.mrb[17].mxu1 }
 0x6d2   :  { %v1031_v60 = vadd.f32 %v1233_v56, %v1030_v59  ;;  %v1541_v61 = vpop.f32.mrb[18].mxu1 }
 0x6d3   :  { %1063 = vst [vmem:[#allocation14 + $0x10] sm:$0xff] %v1039_v58  ;;  %v1042_v52 = vadd.f32 %v1541_v61, %v1233_v56  ;;  %v1033_v62 = vpop.f32.mrb[19].mxu1 }
 0x6d4   :  { %1061 = vst [vmem:[#allocation14] sm:$0xff] %v1031_v60  ;;  %v1034_v63 = vadd.f32 %v1233_v56, %v1033_v62 }
 0x6d5   :  { %1064 = vst [vmem:[#allocation14 + $0x18] sm:$0xff] %v1042_v52 }
 0x6d6   :  { %1062 = vst [vmem:[#allocation14 + $0x8] sm:$0xff] %v1034_v63 }
 0x793   :  { %v904_v3 = vpop.f32.mrb[20].mxu0 }
 0x794   :  { %v910_v5 = vadd.f32 %v904_v3, %v495_v0  ;;  %v1520_v7 = vpop.f32.mrb[21].mxu0 }
 0x795   :  { %v907_v9 = vpop.f32.mrb[22].mxu0 }
 0x796   :  { %1597 = vtanh.f32 %v910_v5  ;;  %v1521_v11 = vpop.f32.mrb[23].mxu0 }
 0x7a0   :  { %v1598_v13 = vpop.eup %1597 }
 0x7a1   :  { %v924_v15 = vpack.c.bf16 %v1598_v13, %v1596_v53 }
 0x7a3   :  { %1543 = vmatmul.mubr.bf16.gmra.mrb[20].mxu1 %v924_v15 }
 0x876   :  { %v1544_v16 = vpop.f32.mrb[20].mxu1 }
 0x877   :  { %v1055_v17 = vadd.f32 %v1544_v16, %v1233_v56  ;;  %v1046_v18 = vpop.f32.mrb[21].mxu1 }
 0x878   :  { %v1047_v19 = vadd.f32 %v1233_v56, %v1046_v18  ;;  %v1545_v21 = vpop.f32.mrb[22].mxu1 }
 0x879   :  { %1067 = vst [vmem:[#allocation14 + $0x30] sm:$0xff] %v1055_v17  ;;  %v1058_v22 = vadd.f32 %v1545_v21, %v1233_v56  ;;  %v1049_v23 = vpop.f32.mrb[23].mxu1 }
 0x87a   :  { %1065 = vst [vmem:[#allocation14 + $0x20] sm:$0xff] %v1047_v19  ;;  %v1050_v43 = vadd.f32 %v1233_v56, %v1049_v23 }
 0x87b   :  { %1068 = vst [vmem:[#allocation14 + $0x38] sm:$0xff] %v1058_v22 }
 0x87c   :  { %1066 = vst [vmem:[#allocation14 + $0x28] sm:$0xff] %v1050_v43 }
 0x87d   :  { %1710 = shalt.err (!%p1707_p11)
}
 0x87e   :  { %s1711_s19 = scalar_lea.hbm %s2159_s7, 1024 }
 0x87f   :  { %p1712_p12 = scmp.ne.s32.totalorder %s2159_s7, %s1711_s19  ;;  %p1715_p13 = scmp.lt.u32.totalorder %s1711_s19, %s2159_s7 }
 0x881   :  { %p1717_p0 = pnand %p1715_p13, %p1712_p12 }
 0x883   :  { %1720 = shalt.err (!%p1717_p0)
}
 0x884   :  { %1080 = dma.vmem_to_hbm [thread:$0]  %s1075_s11, 1024, %s2159_s7, [#allocation6], %s1736_s0, %s1736_s0, %s1737_s13  }
 0x885   :  { %1729 = dma.done.wait [#allocation6], 1024  }
 0x886   :  { %1730 = vsyncadd [#allocation6], 4294966272 }
 0x887   :  { %1084 = vsyncpa [#allocation5], 1 }
 0x888   :  { %1085 = vsyncpa [#allocation10], 1 }
 0x889   :  { %1086 = vsyncpa [#allocation13], 1 }
 0x88a   :  { %1087 = vsyncpa [#allocation6], 1 }
 0x88b   :  { %1088 = vsyncpa [#allocation7], 1 }

</bundles_post_ra>
